<compile_context>
chip_gen: v7x
topology: tpu7x:2x2x1
jax: 0.10.0
libtpu: 0.0.40
codegen_flags: <defaults>
</compile_context>

<pallas_src>
import jax
import jax.numpy as jnp
from jax import lax
from jax.experimental import pallas as pl
from jax.experimental.pallas import tpu as pltpu


# -----------------------------------------------------------------------------
# Pallas kernel
# -----------------------------------------------------------------------------
def seq2seq_attn_kernel(
    xp_ref,      # (T_in,  Bt, D_in)   past window (time-major)
    xf_ref,      # (T_out, Bt, D_fut)  future forecast (time-major)
    wie_ref,     # (D_in, 4H)   encoder W_ih^T
    whe_ref,     # (H,    4H)   encoder W_hh^T
    be_ref,      # (1,    4H)   encoder bias (b_ih + b_hh)
    wdx_ref,     # (D_fut, 4H)  decoder W_ih^T slice for x_t
    wdc_ref,     # (H,     4H)  decoder W_ih^T slice for the context
    whd_ref,     # (H,     4H)  decoder W_hh^T
    bd_ref,      # (1,     4H)  decoder bias
    wfh_ref,     # (H, OUT)     output head weight for h
    wfc_ref,     # (H, OUT)     output head weight for ctx
    bfc_ref,     # (1, OUT)     output head bias
    out_ref,     # (T_out, Bt, OUT)  -> outputs (time-major)
    attn_ref,    # (T_in,  Bt, 1)    -> attention weights of the last step
    xpproj_ref,  # scratch VMEM (T_in,  Bt, 4H)  hoisted encoder input proj
    xfproj_ref,  # scratch VMEM (T_out, Bt, 4H)  hoisted decoder input proj
    enc_ref,     # scratch VMEM (T_in,  Bt, H)   encoder outputs (time-major)
    hh_ref,      # scratch VMEM (T_out, Bt, H)   per-step decoder h
    ch_ref,      # scratch VMEM (T_out, Bt, H)   per-step attention context
):
    T_in, Bt, D_in = xp_ref.shape
    T_out, _, D_fut = xf_ref.shape
    H = whe_ref.shape[0]
    OUT = out_ref.shape[-1]

    # ---- hoisted input projections: two big MXU matmuls, results in VMEM ----
    xpproj_ref[...] = (
        jnp.dot(xp_ref[...].reshape(T_in * Bt, D_in), wie_ref[...],
                preferred_element_type=jnp.float32) + be_ref[...]
    ).reshape(T_in, Bt, 4 * H)
    xfproj_ref[...] = (
        jnp.dot(xf_ref[...].reshape(T_out * Bt, D_fut), wdx_ref[...],
                preferred_element_type=jnp.float32) + bd_ref[...]
    ).reshape(T_out, Bt, 4 * H)

    def gates_to_hc(gates, c):
        # PyTorch LSTM gate order: i, f, g, o
        i = jax.nn.sigmoid(gates[:, 0 * H:1 * H])
        f = jax.nn.sigmoid(gates[:, 1 * H:2 * H])
        g = jnp.tanh(gates[:, 2 * H:3 * H])
        o = jax.nn.sigmoid(gates[:, 3 * H:4 * H])
        c_new = f * c + i * g
        return o * jnp.tanh(c_new), c_new

    def run_loop(n, body, carry, unroll_threshold=16):
        # Fully unroll short fixed-trip recurrences (LLO scheduler visibility);
        # fall back to fori_loop for long horizons to bound trace size and
        # vreg live ranges.
        if n <= unroll_threshold:
            for t in range(n):
                carry = body(t, carry)
            return carry
        return lax.fori_loop(0, n, body, carry)

    # ---------------- encoder LSTM over the past window ----------------
    Whe = whe_ref[...]
    h0 = jnp.zeros((Bt, H), jnp.float32)
    c0 = jnp.zeros((Bt, H), jnp.float32)

    def enc_body(t, carry):
        h, c = carry
        gates = xpproj_ref[t] + jnp.dot(h, Whe, preferred_element_type=jnp.float32)
        h, c = gates_to_hc(gates, c)
        enc_ref[t] = h                       # full-tile store on the leading axis
        return (h, c)

    h, c = run_loop(T_in, enc_body, (h0, c0))

    # ------------- decoder: dot attention + LSTM ----------------------------
    Wdc = wdc_ref[...]
    Whd = whd_ref[...]
    last = T_out - 1

    def dec_body(t, carry):
        h, c = carry
        enc = enc_ref[...]                   # streamed from VMEM every step

        # Luong dot attention, everything kept in (Bt, .)-tile layout:
        #   scores -> one lane reduce (XLU), softmax/ctx reductions are over
        #   the leading (time) axis -> plain VPU ops across (Bt, .) tiles.
        scores = jnp.sum(enc * h[None, :, :], axis=-1, keepdims=True)  # (T_in, Bt, 1)
        m = jnp.max(scores, axis=0, keepdims=True)                     # (1, Bt, 1)
        e = jnp.exp(scores - m)
        p = e / jnp.sum(e, axis=0, keepdims=True)                      # (T_in, Bt, 1)
        ctx = jnp.sum(p * enc, axis=0)                                 # (Bt, H)

        # decoder LSTM gates: two K=H dots (no per-step lane concatenation)
        gates = (xfproj_ref[t]
                 + jnp.dot(ctx, Wdc, preferred_element_type=jnp.float32)
                 + jnp.dot(h, Whd, preferred_element_type=jnp.float32))
        h, c = gates_to_hc(gates, c)

        hh_ref[t] = h                        # full-tile stores on the leading axis
        ch_ref[t] = ctx

        # attention weights of the final step only
        if isinstance(t, int):               # trace-time unrolled loop
            if t == last:
                attn_ref[...] = p
        else:                                # fori_loop fallback (traced t)
            @pl.when(t == last)
            def _():
                attn_ref[...] = p
        return (h, c)

    run_loop(T_out, dec_body, (h, c))

    # ---- output head: two (T_out*Bt, H) matmuls, one store ------------------
    y = (jnp.dot(hh_ref[...].reshape(T_out * Bt, H), wfh_ref[...],
                 preferred_element_type=jnp.float32)
         + jnp.dot(ch_ref[...].reshape(T_out * Bt, H), wfc_ref[...],
                   preferred_element_type=jnp.float32)
         + bfc_ref[...])
    # TODO(synk): for large T_out*OUT, present a lane-dense (>=128 lanes)
    # output slab for unmasked stores; at OUT=2 this one-time store is noise.
    out_ref[...] = y.reshape(T_out, Bt, OUT)


# -----------------------------------------------------------------------------
# Wrapper
# -----------------------------------------------------------------------------
def _round_up(x, m):
    return ((x + m - 1) // m) * m


def _vmem_capacity_bytes():
    try:
        return int(pltpu.get_tpu_info().vmem_capacity_bytes)
    except Exception:
        return 64 * 1024 * 1024        # conservative: v7x per-TC VMEM


def seq2seq_with_attention(x_past, x_future, params, teacher_forcing_ratio=0.0):
    del teacher_forcing_ratio          # forward() never feeds targets back
    B, T_in, D_in = x_past.shape
    _, T_out, D_fut = x_future.shape
    H = params["Whh_enc"].shape[0]
    OUT = params["b_fc"].shape[-1]
    G = 4 * H
    f32 = 4

    # ---- batch padding + generation-aware batch tile -------------------------
    B_pad = max(8, _round_up(B, 8))

    def tile_bytes(bt):
        io = 2 * f32 * bt * (T_in * D_in + T_out * D_fut + T_out * OUT + T_in)
        w = 2 * f32 * (G * (D_in + 3 * H + D_fut + 2) + (2 * H + 1) * OUT)
        sc = f32 * bt * ((T_in + T_out) * G + T_in * H + 2 * T_out * H)
        return io + w + sc

    vmem_cap = _vmem_capacity_bytes()
    budget = int(0.6 * vmem_cap)
    cands = [bt for bt in range(8, B_pad + 1, 8) if B_pad % bt == 0]
    fitting = [bt for bt in cands if tile_bytes(bt) <= budget] or [cands[0]]
    Bt = max(fitting)
    # Prefer >= 2 grid programs (v7x megacore sharding) when it costs at most
    # a 2x smaller batch tile.
    multi = [bt for bt in fitting if B_pad // bt >= 2 and 2 * bt >= Bt]
    if multi:
        Bt = max(multi)
    grid = (B_pad // Bt,)

    vmem_limit = int(min(0.9 * vmem_cap,
                         max(32 * 1024 * 1024, 2 * tile_bytes(Bt))))

    # ---- time-major inputs (pad batch + transpose happen in XLA, once) -------
    if B_pad != B:
        x_past = jnp.pad(x_past, ((0, B_pad - B), (0, 0), (0, 0)))
        x_future = jnp.pad(x_future, ((0, B_pad - B), (0, 0), (0, 0)))
    xp_t = jnp.transpose(x_past, (1, 0, 2)).astype(jnp.float32)
    xf_t = jnp.transpose(x_future, (1, 0, 2)).astype(jnp.float32)

    def batched(shape):                 # (T, Bt, F) tiles along the batch dim
        return pl.BlockSpec(shape, lambda b: (0, b, 0))

    def shared(shape):                  # grid-invariant weights
        # TODO(synk): pipeline_mode=pl.Buffered(1) would single-buffer these
        # grid-invariant weights (halves their VMEM footprint); kept at the
        # default to stay on the well-trodden lowering path.
        return pl.BlockSpec(shape, lambda b: (0,) * len(shape))

    in_specs = [
        batched((T_in, Bt, D_in)),
        batched((T_out, Bt, D_fut)),
        shared((D_in, G)),
        shared((H, G)),
        shared((1, G)),
        shared((D_fut, G)),
        shared((H, G)),
        shared((H, G)),
        shared((1, G)),
        shared((H, OUT)),
        shared((H, OUT)),
        shared((1, OUT)),
    ]
    out_specs = (
        batched((T_out, Bt, OUT)),
        batched((T_in, Bt, 1)),
    )
    out_shape = (
        jax.ShapeDtypeStruct((T_out, B_pad, OUT), jnp.float32),
        jax.ShapeDtypeStruct((T_in, B_pad, 1), jnp.float32),
    )
    # TODO(synk): bf16 weight/scratch storage (2x MXU, half VMEM on v6e/v7x) is
    # left out to preserve the 1e-3 f32 tolerance; on v5e gate math must stay
    # f32 regardless (no bf16 VPU/EUP).
    scratch_shapes = [
        pltpu.VMEM((T_in, Bt, G), jnp.float32),   # hoisted encoder x-proj
        pltpu.VMEM((T_out, Bt, G), jnp.float32),  # hoisted decoder x-proj
        pltpu.VMEM((T_in, Bt, H), jnp.float32),   # encoder outputs (time-major)
        pltpu.VMEM((T_out, Bt, H), jnp.float32),  # decoder h history
        pltpu.VMEM((T_out, Bt, H), jnp.float32),  # attention ctx history
    ]

    flops = 2 * B_pad * (T_in * (D_in + H) * G
                         + T_out * (D_fut + 2 * H) * G
                         + 2 * T_out * T_in * H
                         + 2 * T_out * H * OUT)
    transcendentals = B_pad * (5 * H * (T_in + T_out) + T_out * T_in)
    bytes_accessed = f32 * (xp_t.size + xf_t.size
                            + B_pad * (T_out * OUT + T_in)
                            + G * (D_in + 3 * H + D_fut + 2)
                            + (2 * H + 1) * OUT)

    fn = pl.pallas_call(
        seq2seq_attn_kernel,
        out_shape=out_shape,
        grid=grid,
        in_specs=in_specs,
        out_specs=out_specs,
        scratch_shapes=scratch_shapes,
        compiler_params=pltpu.CompilerParams(
            dimension_semantics=("parallel",),
            vmem_limit_bytes=vmem_limit,
        ),
        cost_estimate=pl.CostEstimate(
            flops=int(flops),
            transcendentals=int(transcendentals),
            bytes_accessed=int(bytes_accessed),
        ),
    )
    out_tm, attn_tm = fn(
        xp_t, xf_t,
        params["Wih_enc"], params["Whh_enc"], params["b_enc"],
        params["Wih_dec_x"], params["Wih_dec_c"], params["Whh_dec"],
        params["b_dec"],
        params["Wfc_h"], params["Wfc_c"], params["b_fc"],
    )
    outputs = jnp.transpose(out_tm, (1, 0, 2))[:B]          # (B, T_out, OUT)
    attn = jnp.transpose(attn_tm[:, :, 0], (1, 0))[:B]      # (B, T_in)
    return outputs, attn


# -----------------------------------------------------------------------------
# Deterministic parameter construction (PyTorch-style uniform(-1/sqrt(H), ..))
# -----------------------------------------------------------------------------
def make_params(key, d_in, d_fut, hidden, out):
    k = 1.0 / jnp.sqrt(jnp.float32(hidden))
    names_shapes = [
        ("Wih_enc", (d_in, 4 * hidden)),
        ("Whh_enc", (hidden, 4 * hidden)),
        ("b_enc", (1, 4 * hidden)),
        ("Wih_dec_x", (d_fut, 4 * hidden)),
        ("Wih_dec_c", (hidden, 4 * hidden)),
        ("Whh_dec", (hidden, 4 * hidden)),
        ("b_dec", (1, 4 * hidden)),
        ("Wfc_h", (hidden, out)),
        ("Wfc_c", (hidden, out)),
        ("b_fc", (1, out)),
    ]
    keys = jax.random.split(key, len(names_shapes))
    return {
        name: jax.random.uniform(kk, shape, jnp.float32, -k, k)
        for kk, (name, shape) in zip(keys, names_shapes)
    }


# -----------------------------------------------------------------------------
# Pure-JAX reference (same math, no Pallas) for a correctness check
# -----------------------------------------------------------------------------
def seq2seq_reference(x_past, x_future, p):
    B, T_in, _ = x_past.shape
    _, T_out, _ = x_future.shape
    H = p["Whh_enc"].shape[0]

    def gates_to_hc(gates, c):
        i = jax.nn.sigmoid(gates[:, :H])
        f = jax.nn.sigmoid(gates[:, H:2 * H])
        g = jnp.tanh(gates[:, 2 * H:3 * H])
        o = jax.nn.sigmoid(gates[:, 3 * H:])
        c = f * c + i * g
        return o * jnp.tanh(c), c

    h = jnp.zeros((B, H), jnp.float32)
    c = jnp.zeros((B, H), jnp.float32)
    enc = []
    for t in range(T_in):
        gates = x_past[:, t, :] @ p["Wih_enc"] + h @ p["Whh_enc"] + p["b_enc"]
        h, c = gates_to_hc(gates, c)
        enc.append(h)
    enc = jnp.stack(enc, axis=1)

    outs = []
    attn = None
    for t in range(T_out):
        x_t = x_future[:, t, :]
        scores = jnp.sum(enc * h[:, None, :], axis=-1)
        attn = jax.nn.softmax(scores, axis=-1)
        ctx = jnp.sum(attn[:, :, None] * enc, axis=1)
        gates = (x_t @ p["Wih_dec_x"] + ctx @ p["Wih_dec_c"]
                 + h @ p["Whh_dec"] + p["b_dec"])
        h, c = gates_to_hc(gates, c)
        outs.append(h @ p["Wfc_h"] + ctx @ p["Wfc_c"] + p["b_fc"])
    return jnp.stack(outs, axis=1), attn


# -----------------------------------------------------------------------------
if __name__ == "__main__":
    B, T_IN, T_OUT = 2, 8, 4          # batch, past window, output window
    D_IN, D_FUT = 6, 4                # past features, forecast features
    HIDDEN, OUT = 32, 2               # LSTM hidden size, decoder output size

    root = jax.random.PRNGKey(0)
    k_par, k_xp, k_xf = jax.random.split(root, 3)
    params = make_params(k_par, D_IN, D_FUT, HIDDEN, OUT)
    x_past = jax.random.normal(k_xp, (B, T_IN, D_IN), jnp.float32)
    x_future = jax.random.normal(k_xf, (B, T_OUT, D_FUT), jnp.float32)

    outputs, attn_weights = jax.jit(seq2seq_with_attention)(x_past, x_future, params)
    jax.block_until_ready((outputs, attn_weights))

    ref_out, ref_attn = seq2seq_reference(x_past, x_future, params)
    assert outputs.shape == (B, T_OUT, OUT)
    assert attn_weights.shape == (B, T_IN)
    assert jnp.allclose(outputs, ref_out, atol=1e-3, rtol=1e-3)
    assert jnp.allclose(attn_weights, ref_attn, atol=1e-3, rtol=1e-3)

    print("KERNEL_OK")
</pallas_src>

<mosaic_0001>
module attributes {stable_mosaic.version = 11 : i64} {
  func.func @seq2seq_attn_kernel(%arg0: i32, %arg1: memref<8x8x6xf32, #tpu.memory_space<vmem>>, %arg2: memref<4x8x4xf32, #tpu.memory_space<vmem>>, %arg3: memref<6x128xf32, #tpu.memory_space<vmem>>, %arg4: memref<32x128xf32, #tpu.memory_space<vmem>>, %arg5: memref<1x128xf32, #tpu.memory_space<vmem>>, %arg6: memref<4x128xf32, #tpu.memory_space<vmem>>, %arg7: memref<32x128xf32, #tpu.memory_space<vmem>>, %arg8: memref<32x128xf32, #tpu.memory_space<vmem>>, %arg9: memref<1x128xf32, #tpu.memory_space<vmem>>, %arg10: memref<32x2xf32, #tpu.memory_space<vmem>>, %arg11: memref<32x2xf32, #tpu.memory_space<vmem>>, %arg12: memref<1x2xf32, #tpu.memory_space<vmem>>, %arg13: memref<4x8x2xf32, #tpu.memory_space<vmem>>, %arg14: memref<8x8x1xf32, #tpu.memory_space<vmem>>, %arg15: memref<8x8x128xf32, #tpu.memory_space<vmem>>, %arg16: memref<4x8x128xf32, #tpu.memory_space<vmem>>, %arg17: memref<8x8x32xf32, #tpu.memory_space<vmem>>, %arg18: memref<4x8x32xf32, #tpu.memory_space<vmem>>, %arg19: memref<4x8x32xf32, #tpu.memory_space<vmem>>) attributes {dimension_semantics = [#tpu.dimension_semantics<parallel>], iteration_bounds = array<i64: 1>, scalar_prefetch = 0 : i64, scratch_operands = 5 : i64, tpu.core_type = #tpu.core_type<tc>, window_params = [{transform_indices = @transform_0, window_bounds = array<i64: 8, 8, 6>}, {transform_indices = @transform_1, window_bounds = array<i64: 4, 8, 4>}, {pipeline_mode = #tpu.pipeline_mode<synchronous>, transform_indices = @transform_2, window_bounds = array<i64: 6, 128>}, {pipeline_mode = #tpu.pipeline_mode<synchronous>, transform_indices = @transform_3, window_bounds = array<i64: 32, 128>}, {pipeline_mode = #tpu.pipeline_mode<synchronous>, transform_indices = @transform_4, window_bounds = array<i64: 1, 128>}, {pipeline_mode = #tpu.pipeline_mode<synchronous>, transform_indices = @transform_5, window_bounds = array<i64: 4, 128>}, {pipeline_mode = #tpu.pipeline_mode<synchronous>, transform_indices = @transform_6, window_bounds = array<i64: 32, 128>}, {pipeline_mode = #tpu.pipeline_mode<synchronous>, transform_indices = @transform_7, window_bounds = array<i64: 32, 128>}, {pipeline_mode = #tpu.pipeline_mode<synchronous>, transform_indices = @transform_8, window_bounds = array<i64: 1, 128>}, {pipeline_mode = #tpu.pipeline_mode<synchronous>, transform_indices = @transform_9, window_bounds = array<i64: 32, 2>}, {pipeline_mode = #tpu.pipeline_mode<synchronous>, transform_indices = @transform_10, window_bounds = array<i64: 32, 2>}, {pipeline_mode = #tpu.pipeline_mode<synchronous>, transform_indices = @transform_11, window_bounds = array<i64: 1, 2>}, {transform_indices = @transform_12, window_bounds = array<i64: 4, 8, 2>}, {transform_indices = @transform_13, window_bounds = array<i64: 8, 8, 1>}]} {
    %c0 = arith.constant 0 : index
    %c0_0 = arith.constant 0 : index
    %c0_1 = arith.constant 0 : index
    %0 = vector.load %arg1[%c0, %c0_0, %c0_1] : memref<8x8x6xf32, #tpu.memory_space<vmem>>, vector<8x8x6xf32>
    %1 = vector.shape_cast %0 : vector<8x8x6xf32> to vector<64x6xf32>
    %c0_2 = arith.constant 0 : index
    %c0_3 = arith.constant 0 : index
    %2 = vector.load %arg3[%c0_2, %c0_3] : memref<6x128xf32, #tpu.memory_space<vmem>>, vector<6x128xf32>
    %cst = arith.constant dense<0.000000e+00> : vector<64x128xf32>
    %3 = tpu.matmul %1, %2, %cst {dimension_numbers = #tpu.dot_dimension_numbers<[1], [0], [0], [1], [0, 0, 1, 1], [], []>} : vector<64x6xf32>, vector<6x128xf32>, vector<64x128xf32> -> vector<64x128xf32>
    %c0_4 = arith.constant 0 : index
    %c0_5 = arith.constant 0 : index
    %4 = vector.load %arg5[%c0_4, %c0_5] : memref<1x128xf32, #tpu.memory_space<vmem>>, vector<1x128xf32>
    %5 = vector.broadcast %4 : vector<1x128xf32> to vector<64x128xf32>
    %6 = arith.addf %3, %5 : vector<64x128xf32>
    %7 = vector.shape_cast %6 : vector<64x128xf32> to vector<8x8x128xf32>
    %c0_6 = arith.constant 0 : index
    %c0_7 = arith.constant 0 : index
    %c0_8 = arith.constant 0 : index
    %8 = vector.load %arg15[%c0_6, %c0_7, %c0_8] : memref<8x8x128xf32, #tpu.memory_space<vmem>>, vector<8x8x128xf32>
    tpu.vector_store %arg15[%c0_6, %c0_7, %c0_8], %7 {strides = array<i32>} : memref<8x8x128xf32, #tpu.memory_space<vmem>>, vector<8x8x128xf32>,
    %c0_9 = arith.constant 0 : index
    %c0_10 = arith.constant 0 : index
    %c0_11 = arith.constant 0 : index
    %9 = vector.load %arg2[%c0_9, %c0_10, %c0_11] : memref<4x8x4xf32, #tpu.memory_space<vmem>>, vector<4x8x4xf32>
    %10 = vector.shape_cast %9 : vector<4x8x4xf32> to vector<32x4xf32>
    %c0_12 = arith.constant 0 : index
    %c0_13 = arith.constant 0 : index
    %11 = vector.load %arg6[%c0_12, %c0_13] : memref<4x128xf32, #tpu.memory_space<vmem>>, vector<4x128xf32>
    %cst_14 = arith.constant dense<0.000000e+00> : vector<32x128xf32>
    %12 = tpu.matmul %10, %11, %cst_14 {dimension_numbers = #tpu.dot_dimension_numbers<[1], [0], [0], [1], [0, 0, 1, 1], [], []>} : vector<32x4xf32>, vector<4x128xf32>, vector<32x128xf32> -> vector<32x128xf32>
    %c0_15 = arith.constant 0 : index
    %c0_16 = arith.constant 0 : index
    %13 = vector.load %arg9[%c0_15, %c0_16] : memref<1x128xf32, #tpu.memory_space<vmem>>, vector<1x128xf32>
    %14 = vector.broadcast %13 : vector<1x128xf32> to vector<32x128xf32>
    %15 = arith.addf %12, %14 : vector<32x128xf32>
    %16 = vector.shape_cast %15 : vector<32x128xf32> to vector<4x8x128xf32>
    %c0_17 = arith.constant 0 : index
    %c0_18 = arith.constant 0 : index
    %c0_19 = arith.constant 0 : index
    %17 = vector.load %arg16[%c0_17, %c0_18, %c0_19] : memref<4x8x128xf32, #tpu.memory_space<vmem>>, vector<4x8x128xf32>
    tpu.vector_store %arg16[%c0_17, %c0_18, %c0_19], %16 {strides = array<i32>} : memref<4x8x128xf32, #tpu.memory_space<vmem>>, vector<4x8x128xf32>,
    %c0_20 = arith.constant 0 : index
    %c0_21 = arith.constant 0 : index
    %18 = vector.load %arg4[%c0_20, %c0_21] : memref<32x128xf32, #tpu.memory_space<vmem>>, vector<32x128xf32>
    %cst_22 = arith.constant 0.000000e+00 : f32
    %19 = vector.broadcast %cst_22 : f32 to vector<8x32xf32>
    %cst_23 = arith.constant 0.000000e+00 : f32
    %20 = vector.broadcast %cst_23 : f32 to vector<8x32xf32>
    %c0_24 = arith.constant 0 : index
    %c0_25 = arith.constant 0 : index
    %c0_26 = arith.constant 0 : index
    %21 = vector.load %arg15[%c0_24, %c0_25, %c0_26] : memref<8x8x128xf32, #tpu.memory_space<vmem>>, vector<1x8x128xf32>
    %22 = vector.shape_cast %21 : vector<1x8x128xf32> to vector<8x128xf32>
    %cst_27 = arith.constant dense<0.000000e+00> : vector<8x128xf32>
    %23 = tpu.matmul %19, %18, %cst_27 {dimension_numbers = #tpu.dot_dimension_numbers<[1], [0], [0], [1], [0, 0, 1, 1], [], []>} : vector<8x32xf32>, vector<32x128xf32>, vector<8x128xf32> -> vector<8x128xf32>
    %24 = arith.addf %22, %23 : vector<8x128xf32>
    %25 = vector.extract_strided_slice %24 {offsets = [0, 0], sizes = [8, 32], strides = [1, 1]} : vector<8x128xf32> to vector<8x32xf32>
    %26 = arith.negf %25 : vector<8x32xf32>
    %27 = math.exp %26 : vector<8x32xf32>
    %cst_28 = arith.constant 1.000000e+00 : f32
    %28 = vector.broadcast %cst_28 : f32 to vector<8x32xf32>
    %29 = arith.addf %28, %27 : vector<8x32xf32>
    %30 = arith.divf %28, %29 : vector<8x32xf32>
    %31 = vector.extract_strided_slice %24 {offsets = [0, 32], sizes = [8, 32], strides = [1, 1]} : vector<8x128xf32> to vector<8x32xf32>
    %32 = arith.negf %31 : vector<8x32xf32>
    %33 = math.exp %32 : vector<8x32xf32>
    %cst_29 = arith.constant 1.000000e+00 : f32
    %34 = vector.broadcast %cst_29 : f32 to vector<8x32xf32>
    %35 = arith.addf %34, %33 : vector<8x32xf32>
    %36 = arith.divf %34, %35 : vector<8x32xf32>
    %37 = vector.extract_strided_slice %24 {offsets = [0, 64], sizes = [8, 32], strides = [1, 1]} : vector<8x128xf32> to vector<8x32xf32>
    %38 = math.tanh %37 : vector<8x32xf32>
    %39 = vector.extract_strided_slice %24 {offsets = [0, 96], sizes = [8, 32], strides = [1, 1]} : vector<8x128xf32> to vector<8x32xf32>
    %40 = arith.negf %39 : vector<8x32xf32>
    %41 = math.exp %40 : vector<8x32xf32>
    %cst_30 = arith.constant 1.000000e+00 : f32
    %42 = vector.broadcast %cst_30 : f32 to vector<8x32xf32>
    %43 = arith.addf %42, %41 : vector<8x32xf32>
    %44 = arith.divf %42, %43 : vector<8x32xf32>
    %45 = arith.mulf %36, %20 : vector<8x32xf32>
    %46 = arith.mulf %30, %38 : vector<8x32xf32>
    %47 = arith.addf %45, %46 : vector<8x32xf32>
    %48 = math.tanh %47 : vector<8x32xf32>
    %49 = arith.mulf %44, %48 : vector<8x32xf32>
    %c0_31 = arith.constant 0 : index
    %c0_32 = arith.constant 0 : index
    %c0_33 = arith.constant 0 : index
    %50 = vector.load %arg17[%c0_31, %c0_32, %c0_33] : memref<8x8x32xf32, #tpu.memory_space<vmem>>, vector<1x8x32xf32>
    %51 = vector.shape_cast %50 : vector<1x8x32xf32> to vector<8x32xf32>
    %52 = vector.shape_cast %49 : vector<8x32xf32> to vector<1x8x32xf32>
    tpu.vector_store %arg17[%c0_31, %c0_32, %c0_33], %52 {strides = array<i32>} : memref<8x8x32xf32, #tpu.memory_space<vmem>>, vector<1x8x32xf32>,
    %c1 = arith.constant 1 : index
    %c0_34 = arith.constant 0 : index
    %c0_35 = arith.constant 0 : index
    %53 = vector.load %arg15[%c1, %c0_34, %c0_35] : memref<8x8x128xf32, #tpu.memory_space<vmem>>, vector<1x8x128xf32>
    %54 = vector.shape_cast %53 : vector<1x8x128xf32> to vector<8x128xf32>
    %cst_36 = arith.constant dense<0.000000e+00> : vector<8x128xf32>
    %55 = tpu.matmul %49, %18, %cst_36 {dimension_numbers = #tpu.dot_dimension_numbers<[1], [0], [0], [1], [0, 0, 1, 1], [], []>} : vector<8x32xf32>, vector<32x128xf32>, vector<8x128xf32> -> vector<8x128xf32>
    %56 = arith.addf %54, %55 : vector<8x128xf32>
    %57 = vector.extract_strided_slice %56 {offsets = [0, 0], sizes = [8, 32], strides = [1, 1]} : vector<8x128xf32> to vector<8x32xf32>
    %58 = arith.negf %57 : vector<8x32xf32>
    %59 = math.exp %58 : vector<8x32xf32>
    %cst_37 = arith.constant 1.000000e+00 : f32
    %60 = vector.broadcast %cst_37 : f32 to vector<8x32xf32>
    %61 = arith.addf %60, %59 : vector<8x32xf32>
    %62 = arith.divf %60, %61 : vector<8x32xf32>
    %63 = vector.extract_strided_slice %56 {offsets = [0, 32], sizes = [8, 32], strides = [1, 1]} : vector<8x128xf32> to vector<8x32xf32>
    %64 = arith.negf %63 : vector<8x32xf32>
    %65 = math.exp %64 : vector<8x32xf32>
    %cst_38 = arith.constant 1.000000e+00 : f32
    %66 = vector.broadcast %cst_38 : f32 to vector<8x32xf32>
    %67 = arith.addf %66, %65 : vector<8x32xf32>
    %68 = arith.divf %66, %67 : vector<8x32xf32>
    %69 = vector.extract_strided_slice %56 {offsets = [0, 64], sizes = [8, 32], strides = [1, 1]} : vector<8x128xf32> to vector<8x32xf32>
    %70 = math.tanh %69 : vector<8x32xf32>
    %71 = vector.extract_strided_slice %56 {offsets = [0, 96], sizes = [8, 32], strides = [1, 1]} : vector<8x128xf32> to vector<8x32xf32>
    %72 = arith.negf %71 : vector<8x32xf32>
    %73 = math.exp %72 : vector<8x32xf32>
    %cst_39 = arith.constant 1.000000e+00 : f32
    %74 = vector.broadcast %cst_39 : f32 to vector<8x32xf32>
    %75 = arith.addf %74, %73 : vector<8x32xf32>
    %76 = arith.divf %74, %75 : vector<8x32xf32>
    %77 = arith.mulf %68, %47 : vector<8x32xf32>
    %78 = arith.mulf %62, %70 : vector<8x32xf32>
    %79 = arith.addf %77, %78 : vector<8x32xf32>
    %80 = math.tanh %79 : vector<8x32xf32>
    %81 = arith.mulf %76, %80 : vector<8x32xf32>
    %c1_40 = arith.constant 1 : index
    %c0_41 = arith.constant 0 : index
    %c0_42 = arith.constant 0 : index
    %82 = vector.load %arg17[%c1_40, %c0_41, %c0_42] : memref<8x8x32xf32, #tpu.memory_space<vmem>>, vector<1x8x32xf32>
    %83 = vector.shape_cast %82 : vector<1x8x32xf32> to vector<8x32xf32>
    %84 = vector.shape_cast %81 : vector<8x32xf32> to vector<1x8x32xf32>
    tpu.vector_store %arg17[%c1_40, %c0_41, %c0_42], %84 {strides = array<i32>} : memref<8x8x32xf32, #tpu.memory_space<vmem>>, vector<1x8x32xf32>,
    %c2 = arith.constant 2 : index
    %c0_43 = arith.constant 0 : index
    %c0_44 = arith.constant 0 : index
    %85 = vector.load %arg15[%c2, %c0_43, %c0_44] : memref<8x8x128xf32, #tpu.memory_space<vmem>>, vector<1x8x128xf32>
    %86 = vector.shape_cast %85 : vector<1x8x128xf32> to vector<8x128xf32>
    %cst_45 = arith.constant dense<0.000000e+00> : vector<8x128xf32>
    %87 = tpu.matmul %81, %18, %cst_45 {dimension_numbers = #tpu.dot_dimension_numbers<[1], [0], [0], [1], [0, 0, 1, 1], [], []>} : vector<8x32xf32>, vector<32x128xf32>, vector<8x128xf32> -> vector<8x128xf32>
    %88 = arith.addf %86, %87 : vector<8x128xf32>
    %89 = vector.extract_strided_slice %88 {offsets = [0, 0], sizes = [8, 32], strides = [1, 1]} : vector<8x128xf32> to vector<8x32xf32>
    %90 = arith.negf %89 : vector<8x32xf32>
    %91 = math.exp %90 : vector<8x32xf32>
    %cst_46 = arith.constant 1.000000e+00 : f32
    %92 = vector.broadcast %cst_46 : f32 to vector<8x32xf32>
    %93 = arith.addf %92, %91 : vector<8x32xf32>
    %94 = arith.divf %92, %93 : vector<8x32xf32>
    %95 = vector.extract_strided_slice %88 {offsets = [0, 32], sizes = [8, 32], strides = [1, 1]} : vector<8x128xf32> to vector<8x32xf32>
    %96 = arith.negf %95 : vector<8x32xf32>
    %97 = math.exp %96 : vector<8x32xf32>
    %cst_47 = arith.constant 1.000000e+00 : f32
    %98 = vector.broadcast %cst_47 : f32 to vector<8x32xf32>
    %99 = arith.addf %98, %97 : vector<8x32xf32>
    %100 = arith.divf %98, %99 : vector<8x32xf32>
    %101 = vector.extract_strided_slice %88 {offsets = [0, 64], sizes = [8, 32], strides = [1, 1]} : vector<8x128xf32> to vector<8x32xf32>
    %102 = math.tanh %101 : vector<8x32xf32>
    %103 = vector.extract_strided_slice %88 {offsets = [0, 96], sizes = [8, 32], strides = [1, 1]} : vector<8x128xf32> to vector<8x32xf32>
    %104 = arith.negf %103 : vector<8x32xf32>
    %105 = math.exp %104 : vector<8x32xf32>
    %cst_48 = arith.constant 1.000000e+00 : f32
    %106 = vector.broadcast %cst_48 : f32 to vector<8x32xf32>
    %107 = arith.addf %106, %105 : vector<8x32xf32>
    %108 = arith.divf %106, %107 : vector<8x32xf32>
    %109 = arith.mulf %100, %79 : vector<8x32xf32>
    %110 = arith.mulf %94, %102 : vector<8x32xf32>
    %111 = arith.addf %109, %110 : vector<8x32xf32>
    %112 = math.tanh %111 : vector<8x32xf32>
    %113 = arith.mulf %108, %112 : vector<8x32xf32>
    %c2_49 = arith.constant 2 : index
    %c0_50 = arith.constant 0 : index
    %c0_51 = arith.constant 0 : index
    %114 = vector.load %arg17[%c2_49, %c0_50, %c0_51] : memref<8x8x32xf32, #tpu.memory_space<vmem>>, vector<1x8x32xf32>
    %115 = vector.shape_cast %114 : vector<1x8x32xf32> to vector<8x32xf32>
    %116 = vector.shape_cast %113 : vector<8x32xf32> to vector<1x8x32xf32>
    tpu.vector_store %arg17[%c2_49, %c0_50, %c0_51], %116 {strides = array<i32>} : memref<8x8x32xf32, #tpu.memory_space<vmem>>, vector<1x8x32xf32>,
    %c3 = arith.constant 3 : index
    %c0_52 = arith.constant 0 : index
    %c0_53 = arith.constant 0 : index
    %117 = vector.load %arg15[%c3, %c0_52, %c0_53] : memref<8x8x128xf32, #tpu.memory_space<vmem>>, vector<1x8x128xf32>
    %118 = vector.shape_cast %117 : vector<1x8x128xf32> to vector<8x128xf32>
    %cst_54 = arith.constant dense<0.000000e+00> : vector<8x128xf32>
    %119 = tpu.matmul %113, %18, %cst_54 {dimension_numbers = #tpu.dot_dimension_numbers<[1], [0], [0], [1], [0, 0, 1, 1], [], []>} : vector<8x32xf32>, vector<32x128xf32>, vector<8x128xf32> -> vector<8x128xf32>
    %120 = arith.addf %118, %119 : vector<8x128xf32>
    %121 = vector.extract_strided_slice %120 {offsets = [0, 0], sizes = [8, 32], strides = [1, 1]} : vector<8x128xf32> to vector<8x32xf32>
    %122 = arith.negf %121 : vector<8x32xf32>
    %123 = math.exp %122 : vector<8x32xf32>
    %cst_55 = arith.constant 1.000000e+00 : f32
    %124 = vector.broadcast %cst_55 : f32 to vector<8x32xf32>
    %125 = arith.addf %124, %123 : vector<8x32xf32>
    %126 = arith.divf %124, %125 : vector<8x32xf32>
    %127 = vector.extract_strided_slice %120 {offsets = [0, 32], sizes = [8, 32], strides = [1, 1]} : vector<8x128xf32> to vector<8x32xf32>
    %128 = arith.negf %127 : vector<8x32xf32>
    %129 = math.exp %128 : vector<8x32xf32>
    %cst_56 = arith.constant 1.000000e+00 : f32
    %130 = vector.broadcast %cst_56 : f32 to vector<8x32xf32>
    %131 = arith.addf %130, %129 : vector<8x32xf32>
    %132 = arith.divf %130, %131 : vector<8x32xf32>
    %133 = vector.extract_strided_slice %120 {offsets = [0, 64], sizes = [8, 32], strides = [1, 1]} : vector<8x128xf32> to vector<8x32xf32>
    %134 = math.tanh %133 : vector<8x32xf32>
    %135 = vector.extract_strided_slice %120 {offsets = [0, 96], sizes = [8, 32], strides = [1, 1]} : vector<8x128xf32> to vector<8x32xf32>
    %136 = arith.negf %135 : vector<8x32xf32>
    %137 = math.exp %136 : vector<8x32xf32>
    %cst_57 = arith.constant 1.000000e+00 : f32
    %138 = vector.broadcast %cst_57 : f32 to vector<8x32xf32>
    %139 = arith.addf %138, %137 : vector<8x32xf32>
    %140 = arith.divf %138, %139 : vector<8x32xf32>
    %141 = arith.mulf %132, %111 : vector<8x32xf32>
    %142 = arith.mulf %126, %134 : vector<8x32xf32>
    %143 = arith.addf %141, %142 : vector<8x32xf32>
    %144 = math.tanh %143 : vector<8x32xf32>
    %145 = arith.mulf %140, %144 : vector<8x32xf32>
    %c3_58 = arith.constant 3 : index
    %c0_59 = arith.constant 0 : index
    %c0_60 = arith.constant 0 : index
    %146 = vector.load %arg17[%c3_58, %c0_59, %c0_60] : memref<8x8x32xf32, #tpu.memory_space<vmem>>, vector<1x8x32xf32>
    %147 = vector.shape_cast %146 : vector<1x8x32xf32> to vector<8x32xf32>
    %148 = vector.shape_cast %145 : vector<8x32xf32> to vector<1x8x32xf32>
    tpu.vector_store %arg17[%c3_58, %c0_59, %c0_60], %148 {strides = array<i32>} : memref<8x8x32xf32, #tpu.memory_space<vmem>>, vector<1x8x32xf32>,
    %c4 = arith.constant 4 : index
    %c0_61 = arith.constant 0 : index
    %c0_62 = arith.constant 0 : index
    %149 = vector.load %arg15[%c4, %c0_61, %c0_62] : memref<8x8x128xf32, #tpu.memory_space<vmem>>, vector<1x8x128xf32>
    %150 = vector.shape_cast %149 : vector<1x8x128xf32> to vector<8x128xf32>
    %cst_63 = arith.constant dense<0.000000e+00> : vector<8x128xf32>
    %151 = tpu.matmul %145, %18, %cst_63 {dimension_numbers = #tpu.dot_dimension_numbers<[1], [0], [0], [1], [0, 0, 1, 1], [], []>} : vector<8x32xf32>, vector<32x128xf32>, vector<8x128xf32> -> vector<8x128xf32>
    %152 = arith.addf %150, %151 : vector<8x128xf32>
    %153 = vector.extract_strided_slice %152 {offsets = [0, 0], sizes = [8, 32], strides = [1, 1]} : vector<8x128xf32> to vector<8x32xf32>
    %154 = arith.negf %153 : vector<8x32xf32>
    %155 = math.exp %154 : vector<8x32xf32>
    %cst_64 = arith.constant 1.000000e+00 : f32
    %156 = vector.broadcast %cst_64 : f32 to vector<8x32xf32>
    %157 = arith.addf %156, %155 : vector<8x32xf32>
    %158 = arith.divf %156, %157 : vector<8x32xf32>
    %159 = vector.extract_strided_slice %152 {offsets = [0, 32], sizes = [8, 32], strides = [1, 1]} : vector<8x128xf32> to vector<8x32xf32>
    %160 = arith.negf %159 : vector<8x32xf32>
    %161 = math.exp %160 : vector<8x32xf32>
    %cst_65 = arith.constant 1.000000e+00 : f32
    %162 = vector.broadcast %cst_65 : f32 to vector<8x32xf32>
    %163 = arith.addf %162, %161 : vector<8x32xf32>
    %164 = arith.divf %162, %163 : vector<8x32xf32>
    %165 = vector.extract_strided_slice %152 {offsets = [0, 64], sizes = [8, 32], strides = [1, 1]} : vector<8x128xf32> to vector<8x32xf32>
    %166 = math.tanh %165 : vector<8x32xf32>
    %167 = vector.extract_strided_slice %152 {offsets = [0, 96], sizes = [8, 32], strides = [1, 1]} : vector<8x128xf32> to vector<8x32xf32>
    %168 = arith.negf %167 : vector<8x32xf32>
    %169 = math.exp %168 : vector<8x32xf32>
    %cst_66 = arith.constant 1.000000e+00 : f32
    %170 = vector.broadcast %cst_66 : f32 to vector<8x32xf32>
    %171 = arith.addf %170, %169 : vector<8x32xf32>
    %172 = arith.divf %170, %171 : vector<8x32xf32>
    %173 = arith.mulf %164, %143 : vector<8x32xf32>
    %174 = arith.mulf %158, %166 : vector<8x32xf32>
    %175 = arith.addf %173, %174 : vector<8x32xf32>
    %176 = math.tanh %175 : vector<8x32xf32>
    %177 = arith.mulf %172, %176 : vector<8x32xf32>
    %c4_67 = arith.constant 4 : index
    %c0_68 = arith.constant 0 : index
    %c0_69 = arith.constant 0 : index
    %178 = vector.load %arg17[%c4_67, %c0_68, %c0_69] : memref<8x8x32xf32, #tpu.memory_space<vmem>>, vector<1x8x32xf32>
    %179 = vector.shape_cast %178 : vector<1x8x32xf32> to vector<8x32xf32>
    %180 = vector.shape_cast %177 : vector<8x32xf32> to vector<1x8x32xf32>
    tpu.vector_store %arg17[%c4_67, %c0_68, %c0_69], %180 {strides = array<i32>} : memref<8x8x32xf32, #tpu.memory_space<vmem>>, vector<1x8x32xf32>,
    %c5 = arith.constant 5 : index
    %c0_70 = arith.constant 0 : index
    %c0_71 = arith.constant 0 : index
    %181 = vector.load %arg15[%c5, %c0_70, %c0_71] : memref<8x8x128xf32, #tpu.memory_space<vmem>>, vector<1x8x128xf32>
    %182 = vector.shape_cast %181 : vector<1x8x128xf32> to vector<8x128xf32>
    %cst_72 = arith.constant dense<0.000000e+00> : vector<8x128xf32>
    %183 = tpu.matmul %177, %18, %cst_72 {dimension_numbers = #tpu.dot_dimension_numbers<[1], [0], [0], [1], [0, 0, 1, 1], [], []>} : vector<8x32xf32>, vector<32x128xf32>, vector<8x128xf32> -> vector<8x128xf32>
    %184 = arith.addf %182, %183 : vector<8x128xf32>
    %185 = vector.extract_strided_slice %184 {offsets = [0, 0], sizes = [8, 32], strides = [1, 1]} : vector<8x128xf32> to vector<8x32xf32>
    %186 = arith.negf %185 : vector<8x32xf32>
    %187 = math.exp %186 : vector<8x32xf32>
    %cst_73 = arith.constant 1.000000e+00 : f32
    %188 = vector.broadcast %cst_73 : f32 to vector<8x32xf32>
    %189 = arith.addf %188, %187 : vector<8x32xf32>
    %190 = arith.divf %188, %189 : vector<8x32xf32>
    %191 = vector.extract_strided_slice %184 {offsets = [0, 32], sizes = [8, 32], strides = [1, 1]} : vector<8x128xf32> to vector<8x32xf32>
    %192 = arith.negf %191 : vector<8x32xf32>
    %193 = math.exp %192 : vector<8x32xf32>
    %cst_74 = arith.constant 1.000000e+00 : f32
    %194 = vector.broadcast %cst_74 : f32 to vector<8x32xf32>
    %195 = arith.addf %194, %193 : vector<8x32xf32>
    %196 = arith.divf %194, %195 : vector<8x32xf32>
    %197 = vector.extract_strided_slice %184 {offsets = [0, 64], sizes = [8, 32], strides = [1, 1]} : vector<8x128xf32> to vector<8x32xf32>
    %198 = math.tanh %197 : vector<8x32xf32>
    %199 = vector.extract_strided_slice %184 {offsets = [0, 96], sizes = [8, 32], strides = [1, 1]} : vector<8x128xf32> to vector<8x32xf32>
    %200 = arith.negf %199 : vector<8x32xf32>
    %201 = math.exp %200 : vector<8x32xf32>
    %cst_75 = arith.constant 1.000000e+00 : f32
    %202 = vector.broadcast %cst_75 : f32 to vector<8x32xf32>
    %203 = arith.addf %202, %201 : vector<8x32xf32>
    %204 = arith.divf %202, %203 : vector<8x32xf32>
    %205 = arith.mulf %196, %175 : vector<8x32xf32>
    %206 = arith.mulf %190, %198 : vector<8x32xf32>
    %207 = arith.addf %205, %206 : vector<8x32xf32>
    %208 = math.tanh %207 : vector<8x32xf32>
    %209 = arith.mulf %204, %208 : vector<8x32xf32>
    %c5_76 = arith.constant 5 : index
    %c0_77 = arith.constant 0 : index
    %c0_78 = arith.constant 0 : index
    %210 = vector.load %arg17[%c5_76, %c0_77, %c0_78] : memref<8x8x32xf32, #tpu.memory_space<vmem>>, vector<1x8x32xf32>
    %211 = vector.shape_cast %210 : vector<1x8x32xf32> to vector<8x32xf32>
    %212 = vector.shape_cast %209 : vector<8x32xf32> to vector<1x8x32xf32>
    tpu.vector_store %arg17[%c5_76, %c0_77, %c0_78], %212 {strides = array<i32>} : memref<8x8x32xf32, #tpu.memory_space<vmem>>, vector<1x8x32xf32>,
    %c6 = arith.constant 6 : index
    %c0_79 = arith.constant 0 : index
    %c0_80 = arith.constant 0 : index
    %213 = vector.load %arg15[%c6, %c0_79, %c0_80] : memref<8x8x128xf32, #tpu.memory_space<vmem>>, vector<1x8x128xf32>
    %214 = vector.shape_cast %213 : vector<1x8x128xf32> to vector<8x128xf32>
    %cst_81 = arith.constant dense<0.000000e+00> : vector<8x128xf32>
    %215 = tpu.matmul %209, %18, %cst_81 {dimension_numbers = #tpu.dot_dimension_numbers<[1], [0], [0], [1], [0, 0, 1, 1], [], []>} : vector<8x32xf32>, vector<32x128xf32>, vector<8x128xf32> -> vector<8x128xf32>
    %216 = arith.addf %214, %215 : vector<8x128xf32>
    %217 = vector.extract_strided_slice %216 {offsets = [0, 0], sizes = [8, 32], strides = [1, 1]} : vector<8x128xf32> to vector<8x32xf32>
    %218 = arith.negf %217 : vector<8x32xf32>
    %219 = math.exp %218 : vector<8x32xf32>
    %cst_82 = arith.constant 1.000000e+00 : f32
    %220 = vector.broadcast %cst_82 : f32 to vector<8x32xf32>
    %221 = arith.addf %220, %219 : vector<8x32xf32>
    %222 = arith.divf %220, %221 : vector<8x32xf32>
    %223 = vector.extract_strided_slice %216 {offsets = [0, 32], sizes = [8, 32], strides = [1, 1]} : vector<8x128xf32> to vector<8x32xf32>
    %224 = arith.negf %223 : vector<8x32xf32>
    %225 = math.exp %224 : vector<8x32xf32>
    %cst_83 = arith.constant 1.000000e+00 : f32
    %226 = vector.broadcast %cst_83 : f32 to vector<8x32xf32>
    %227 = arith.addf %226, %225 : vector<8x32xf32>
    %228 = arith.divf %226, %227 : vector<8x32xf32>
    %229 = vector.extract_strided_slice %216 {offsets = [0, 64], sizes = [8, 32], strides = [1, 1]} : vector<8x128xf32> to vector<8x32xf32>
    %230 = math.tanh %229 : vector<8x32xf32>
    %231 = vector.extract_strided_slice %216 {offsets = [0, 96], sizes = [8, 32], strides = [1, 1]} : vector<8x128xf32> to vector<8x32xf32>
    %232 = arith.negf %231 : vector<8x32xf32>
    %233 = math.exp %232 : vector<8x32xf32>
    %cst_84 = arith.constant 1.000000e+00 : f32
    %234 = vector.broadcast %cst_84 : f32 to vector<8x32xf32>
    %235 = arith.addf %234, %233 : vector<8x32xf32>
    %236 = arith.divf %234, %235 : vector<8x32xf32>
    %237 = arith.mulf %228, %207 : vector<8x32xf32>
    %238 = arith.mulf %222, %230 : vector<8x32xf32>
    %239 = arith.addf %237, %238 : vector<8x32xf32>
    %240 = math.tanh %239 : vector<8x32xf32>
    %241 = arith.mulf %236, %240 : vector<8x32xf32>
    %c6_85 = arith.constant 6 : index
    %c0_86 = arith.constant 0 : index
    %c0_87 = arith.constant 0 : index
    %242 = vector.load %arg17[%c6_85, %c0_86, %c0_87] : memref<8x8x32xf32, #tpu.memory_space<vmem>>, vector<1x8x32xf32>
    %243 = vector.shape_cast %242 : vector<1x8x32xf32> to vector<8x32xf32>
    %244 = vector.shape_cast %241 : vector<8x32xf32> to vector<1x8x32xf32>
    tpu.vector_store %arg17[%c6_85, %c0_86, %c0_87], %244 {strides = array<i32>} : memref<8x8x32xf32, #tpu.memory_space<vmem>>, vector<1x8x32xf32>,
    %c7 = arith.constant 7 : index
    %c0_88 = arith.constant 0 : index
    %c0_89 = arith.constant 0 : index
    %245 = vector.load %arg15[%c7, %c0_88, %c0_89] : memref<8x8x128xf32, #tpu.memory_space<vmem>>, vector<1x8x128xf32>
    %246 = vector.shape_cast %245 : vector<1x8x128xf32> to vector<8x128xf32>
    %cst_90 = arith.constant dense<0.000000e+00> : vector<8x128xf32>
    %247 = tpu.matmul %241, %18, %cst_90 {dimension_numbers = #tpu.dot_dimension_numbers<[1], [0], [0], [1], [0, 0, 1, 1], [], []>} : vector<8x32xf32>, vector<32x128xf32>, vector<8x128xf32> -> vector<8x128xf32>
    %248 = arith.addf %246, %247 : vector<8x128xf32>
    %249 = vector.extract_strided_slice %248 {offsets = [0, 0], sizes = [8, 32], strides = [1, 1]} : vector<8x128xf32> to vector<8x32xf32>
    %250 = arith.negf %249 : vector<8x32xf32>
    %251 = math.exp %250 : vector<8x32xf32>
    %cst_91 = arith.constant 1.000000e+00 : f32
    %252 = vector.broadcast %cst_91 : f32 to vector<8x32xf32>
    %253 = arith.addf %252, %251 : vector<8x32xf32>
    %254 = arith.divf %252, %253 : vector<8x32xf32>
    %255 = vector.extract_strided_slice %248 {offsets = [0, 32], sizes = [8, 32], strides = [1, 1]} : vector<8x128xf32> to vector<8x32xf32>
    %256 = arith.negf %255 : vector<8x32xf32>
    %257 = math.exp %256 : vector<8x32xf32>
    %cst_92 = arith.constant 1.000000e+00 : f32
    %258 = vector.broadcast %cst_92 : f32 to vector<8x32xf32>
    %259 = arith.addf %258, %257 : vector<8x32xf32>
    %260 = arith.divf %258, %259 : vector<8x32xf32>
    %261 = vector.extract_strided_slice %248 {offsets = [0, 64], sizes = [8, 32], strides = [1, 1]} : vector<8x128xf32> to vector<8x32xf32>
    %262 = math.tanh %261 : vector<8x32xf32>
    %263 = vector.extract_strided_slice %248 {offsets = [0, 96], sizes = [8, 32], strides = [1, 1]} : vector<8x128xf32> to vector<8x32xf32>
    %264 = arith.negf %263 : vector<8x32xf32>
    %265 = math.exp %264 : vector<8x32xf32>
    %cst_93 = arith.constant 1.000000e+00 : f32
    %266 = vector.broadcast %cst_93 : f32 to vector<8x32xf32>
    %267 = arith.addf %266, %265 : vector<8x32xf32>
    %268 = arith.divf %266, %267 : vector<8x32xf32>
    %269 = arith.mulf %260, %239 : vector<8x32xf32>
    %270 = arith.mulf %254, %262 : vector<8x32xf32>
    %271 = arith.addf %269, %270 : vector<8x32xf32>
    %272 = math.tanh %271 : vector<8x32xf32>
    %273 = arith.mulf %268, %272 : vector<8x32xf32>
    %c7_94 = arith.constant 7 : index
    %c0_95 = arith.constant 0 : index
    %c0_96 = arith.constant 0 : index
    %274 = vector.load %arg17[%c7_94, %c0_95, %c0_96] : memref<8x8x32xf32, #tpu.memory_space<vmem>>, vector<1x8x32xf32>
    %275 = vector.shape_cast %274 : vector<1x8x32xf32> to vector<8x32xf32>
    %276 = vector.shape_cast %273 : vector<8x32xf32> to vector<1x8x32xf32>
    tpu.vector_store %arg17[%c7_94, %c0_95, %c0_96], %276 {strides = array<i32>} : memref<8x8x32xf32, #tpu.memory_space<vmem>>, vector<1x8x32xf32>,
    %c0_97 = arith.constant 0 : index
    %c0_98 = arith.constant 0 : index
    %277 = vector.load %arg7[%c0_97, %c0_98] : memref<32x128xf32, #tpu.memory_space<vmem>>, vector<32x128xf32>
    %c0_99 = arith.constant 0 : index
    %c0_100 = arith.constant 0 : index
    %278 = vector.load %arg8[%c0_99, %c0_100] : memref<32x128xf32, #tpu.memory_space<vmem>>, vector<32x128xf32>
    %c0_101 = arith.constant 0 : index
    %c0_102 = arith.constant 0 : index
    %c0_103 = arith.constant 0 : index
    %279 = vector.load %arg17[%c0_101, %c0_102, %c0_103] : memref<8x8x32xf32, #tpu.memory_space<vmem>>, vector<8x8x32xf32>
    %280 = vector.shape_cast %273 : vector<8x32xf32> to vector<1x8x32xf32>
    %281 = vector.broadcast %280 : vector<1x8x32xf32> to vector<8x8x32xf32>
    %282 = arith.mulf %279, %281 : vector<8x8x32xf32>
    %cst_104 = arith.constant dense<0.000000e+00> : vector<8x8xf32>
    %283 = vector.multi_reduction <add>, %282, %cst_104 [2] : vector<8x8x32xf32> to vector<8x8xf32>
    %284 = vector.shape_cast %283 : vector<8x8xf32> to vector<8x8x1xf32>
    %cst_105 = arith.constant dense<0xFF800000> : vector<8x1xf32>
    %285 = vector.multi_reduction <maximumf>, %284, %cst_105 [0] : vector<8x8x1xf32> to vector<8x1xf32>
    %286 = vector.shape_cast %285 : vector<8x1xf32> to vector<1x8x1xf32>
    %287 = vector.broadcast %286 : vector<1x8x1xf32> to vector<8x8x1xf32>
    %288 = arith.subf %284, %287 : vector<8x8x1xf32>
    %289 = math.exp %288 : vector<8x8x1xf32>
    %cst_106 = arith.constant dense<0.000000e+00> : vector<8x1xf32>
    %290 = vector.multi_reduction <add>, %289, %cst_106 [0] : vector<8x8x1xf32> to vector<8x1xf32>
    %291 = vector.shape_cast %290 : vector<8x1xf32> to vector<1x8x1xf32>
    %292 = vector.broadcast %291 : vector<1x8x1xf32> to vector<8x8x1xf32>
    %293 = arith.divf %289, %292 : vector<8x8x1xf32>
    %294 = vector.broadcast %293 : vector<8x8x1xf32> to vector<8x8x32xf32>
    %295 = arith.mulf %294, %279 : vector<8x8x32xf32>
    %cst_107 = arith.constant dense<0.000000e+00> : vector<8x32xf32>
    %296 = vector.multi_reduction <add>, %295, %cst_107 [0] : vector<8x8x32xf32> to vector<8x32xf32>
    %c0_108 = arith.constant 0 : index
    %c0_109 = arith.constant 0 : index
    %c0_110 = arith.constant 0 : index
    %297 = vector.load %arg16[%c0_108, %c0_109, %c0_110] : memref<4x8x128xf32, #tpu.memory_space<vmem>>, vector<1x8x128xf32>
    %298 = vector.shape_cast %297 : vector<1x8x128xf32> to vector<8x128xf32>
    %cst_111 = arith.constant dense<0.000000e+00> : vector<8x128xf32>
    %299 = tpu.matmul %296, %277, %cst_111 {dimension_numbers = #tpu.dot_dimension_numbers<[1], [0], [0], [1], [0, 0, 1, 1], [], []>} : vector<8x32xf32>, vector<32x128xf32>, vector<8x128xf32> -> vector<8x128xf32>
    %300 = arith.addf %298, %299 : vector<8x128xf32>
    %cst_112 = arith.constant dense<0.000000e+00> : vector<8x128xf32>
    %301 = tpu.matmul %273, %278, %cst_112 {dimension_numbers = #tpu.dot_dimension_numbers<[1], [0], [0], [1], [0, 0, 1, 1], [], []>} : vector<8x32xf32>, vector<32x128xf32>, vector<8x128xf32> -> vector<8x128xf32>
    %302 = arith.addf %300, %301 : vector<8x128xf32>
    %303 = vector.extract_strided_slice %302 {offsets = [0, 0], sizes = [8, 32], strides = [1, 1]} : vector<8x128xf32> to vector<8x32xf32>
    %304 = arith.negf %303 : vector<8x32xf32>
    %305 = math.exp %304 : vector<8x32xf32>
    %cst_113 = arith.constant 1.000000e+00 : f32
    %306 = vector.broadcast %cst_113 : f32 to vector<8x32xf32>
    %307 = arith.addf %306, %305 : vector<8x32xf32>
    %308 = arith.divf %306, %307 : vector<8x32xf32>
    %309 = vector.extract_strided_slice %302 {offsets = [0, 32], sizes = [8, 32], strides = [1, 1]} : vector<8x128xf32> to vector<8x32xf32>
    %310 = arith.negf %309 : vector<8x32xf32>
    %311 = math.exp %310 : vector<8x32xf32>
    %cst_114 = arith.constant 1.000000e+00 : f32
    %312 = vector.broadcast %cst_114 : f32 to vector<8x32xf32>
    %313 = arith.addf %312, %311 : vector<8x32xf32>
    %314 = arith.divf %312, %313 : vector<8x32xf32>
    %315 = vector.extract_strided_slice %302 {offsets = [0, 64], sizes = [8, 32], strides = [1, 1]} : vector<8x128xf32> to vector<8x32xf32>
    %316 = math.tanh %315 : vector<8x32xf32>
    %317 = vector.extract_strided_slice %302 {offsets = [0, 96], sizes = [8, 32], strides = [1, 1]} : vector<8x128xf32> to vector<8x32xf32>
    %318 = arith.negf %317 : vector<8x32xf32>
    %319 = math.exp %318 : vector<8x32xf32>
    %cst_115 = arith.constant 1.000000e+00 : f32
    %320 = vector.broadcast %cst_115 : f32 to vector<8x32xf32>
    %321 = arith.addf %320, %319 : vector<8x32xf32>
    %322 = arith.divf %320, %321 : vector<8x32xf32>
    %323 = arith.mulf %314, %271 : vector<8x32xf32>
    %324 = arith.mulf %308, %316 : vector<8x32xf32>
    %325 = arith.addf %323, %324 : vector<8x32xf32>
    %326 = math.tanh %325 : vector<8x32xf32>
    %327 = arith.mulf %322, %326 : vector<8x32xf32>
    %c0_116 = arith.constant 0 : index
    %c0_117 = arith.constant 0 : index
    %c0_118 = arith.constant 0 : index
    %328 = vector.load %arg18[%c0_116, %c0_117, %c0_118] : memref<4x8x32xf32, #tpu.memory_space<vmem>>, vector<1x8x32xf32>
    %329 = vector.shape_cast %328 : vector<1x8x32xf32> to vector<8x32xf32>
    %330 = vector.shape_cast %327 : vector<8x32xf32> to vector<1x8x32xf32>
    tpu.vector_store %arg18[%c0_116, %c0_117, %c0_118], %330 {strides = array<i32>} : memref<4x8x32xf32, #tpu.memory_space<vmem>>, vector<1x8x32xf32>,
    %c0_119 = arith.constant 0 : index
    %c0_120 = arith.constant 0 : index
    %c0_121 = arith.constant 0 : index
    %331 = vector.load %arg19[%c0_119, %c0_120, %c0_121] : memref<4x8x32xf32, #tpu.memory_space<vmem>>, vector<1x8x32xf32>
    %332 = vector.shape_cast %331 : vector<1x8x32xf32> to vector<8x32xf32>
    %333 = vector.shape_cast %296 : vector<8x32xf32> to vector<1x8x32xf32>
    tpu.vector_store %arg19[%c0_119, %c0_120, %c0_121], %333 {strides = array<i32>} : memref<4x8x32xf32, #tpu.memory_space<vmem>>, vector<1x8x32xf32>,
    %c0_122 = arith.constant 0 : index
    %c0_123 = arith.constant 0 : index
    %c0_124 = arith.constant 0 : index
    %334 = vector.load %arg17[%c0_122, %c0_123, %c0_124] : memref<8x8x32xf32, #tpu.memory_space<vmem>>, vector<8x8x32xf32>
    %335 = vector.shape_cast %327 : vector<8x32xf32> to vector<1x8x32xf32>
    %336 = vector.broadcast %335 : vector<1x8x32xf32> to vector<8x8x32xf32>
    %337 = arith.mulf %334, %336 : vector<8x8x32xf32>
    %cst_125 = arith.constant dense<0.000000e+00> : vector<8x8xf32>
    %338 = vector.multi_reduction <add>, %337, %cst_125 [2] : vector<8x8x32xf32> to vector<8x8xf32>
    %339 = vector.shape_cast %338 : vector<8x8xf32> to vector<8x8x1xf32>
    %cst_126 = arith.constant dense<0xFF800000> : vector<8x1xf32>
    %340 = vector.multi_reduction <maximumf>, %339, %cst_126 [0] : vector<8x8x1xf32> to vector<8x1xf32>
    %341 = vector.shape_cast %340 : vector<8x1xf32> to vector<1x8x1xf32>
    %342 = vector.broadcast %341 : vector<1x8x1xf32> to vector<8x8x1xf32>
    %343 = arith.subf %339, %342 : vector<8x8x1xf32>
    %344 = math.exp %343 : vector<8x8x1xf32>
    %cst_127 = arith.constant dense<0.000000e+00> : vector<8x1xf32>
    %345 = vector.multi_reduction <add>, %344, %cst_127 [0] : vector<8x8x1xf32> to vector<8x1xf32>
    %346 = vector.shape_cast %345 : vector<8x1xf32> to vector<1x8x1xf32>
    %347 = vector.broadcast %346 : vector<1x8x1xf32> to vector<8x8x1xf32>
    %348 = arith.divf %344, %347 : vector<8x8x1xf32>
    %349 = vector.broadcast %348 : vector<8x8x1xf32> to vector<8x8x32xf32>
    %350 = arith.mulf %349, %334 : vector<8x8x32xf32>
    %cst_128 = arith.constant dense<0.000000e+00> : vector<8x32xf32>
    %351 = vector.multi_reduction <add>, %350, %cst_128 [0] : vector<8x8x32xf32> to vector<8x32xf32>
    %c1_129 = arith.constant 1 : index
    %c0_130 = arith.constant 0 : index
    %c0_131 = arith.constant 0 : index
    %352 = vector.load %arg16[%c1_129, %c0_130, %c0_131] : memref<4x8x128xf32, #tpu.memory_space<vmem>>, vector<1x8x128xf32>
    %353 = vector.shape_cast %352 : vector<1x8x128xf32> to vector<8x128xf32>
    %cst_132 = arith.constant dense<0.000000e+00> : vector<8x128xf32>
    %354 = tpu.matmul %351, %277, %cst_132 {dimension_numbers = #tpu.dot_dimension_numbers<[1], [0], [0], [1], [0, 0, 1, 1], [], []>} : vector<8x32xf32>, vector<32x128xf32>, vector<8x128xf32> -> vector<8x128xf32>
    %355 = arith.addf %353, %354 : vector<8x128xf32>
    %cst_133 = arith.constant dense<0.000000e+00> : vector<8x128xf32>
    %356 = tpu.matmul %327, %278, %cst_133 {dimension_numbers = #tpu.dot_dimension_numbers<[1], [0], [0], [1], [0, 0, 1, 1], [], []>} : vector<8x32xf32>, vector<32x128xf32>, vector<8x128xf32> -> vector<8x128xf32>
    %357 = arith.addf %355, %356 : vector<8x128xf32>
    %358 = vector.extract_strided_slice %357 {offsets = [0, 0], sizes = [8, 32], strides = [1, 1]} : vector<8x128xf32> to vector<8x32xf32>
    %359 = arith.negf %358 : vector<8x32xf32>
    %360 = math.exp %359 : vector<8x32xf32>
    %cst_134 = arith.constant 1.000000e+00 : f32
    %361 = vector.broadcast %cst_134 : f32 to vector<8x32xf32>
    %362 = arith.addf %361, %360 : vector<8x32xf32>
    %363 = arith.divf %361, %362 : vector<8x32xf32>
    %364 = vector.extract_strided_slice %357 {offsets = [0, 32], sizes = [8, 32], strides = [1, 1]} : vector<8x128xf32> to vector<8x32xf32>
    %365 = arith.negf %364 : vector<8x32xf32>
    %366 = math.exp %365 : vector<8x32xf32>
    %cst_135 = arith.constant 1.000000e+00 : f32
    %367 = vector.broadcast %cst_135 : f32 to vector<8x32xf32>
    %368 = arith.addf %367, %366 : vector<8x32xf32>
    %369 = arith.divf %367, %368 : vector<8x32xf32>
    %370 = vector.extract_strided_slice %357 {offsets = [0, 64], sizes = [8, 32], strides = [1, 1]} : vector<8x128xf32> to vector<8x32xf32>
    %371 = math.tanh %370 : vector<8x32xf32>
    %372 = vector.extract_strided_slice %357 {offsets = [0, 96], sizes = [8, 32], strides = [1, 1]} : vector<8x128xf32> to vector<8x32xf32>
    %373 = arith.negf %372 : vector<8x32xf32>
    %374 = math.exp %373 : vector<8x32xf32>
    %cst_136 = arith.constant 1.000000e+00 : f32
    %375 = vector.broadcast %cst_136 : f32 to vector<8x32xf32>
    %376 = arith.addf %375, %374 : vector<8x32xf32>
    %377 = arith.divf %375, %376 : vector<8x32xf32>
    %378 = arith.mulf %369, %325 : vector<8x32xf32>
    %379 = arith.mulf %363, %371 : vector<8x32xf32>
    %380 = arith.addf %378, %379 : vector<8x32xf32>
    %381 = math.tanh %380 : vector<8x32xf32>
    %382 = arith.mulf %377, %381 : vector<8x32xf32>
    %c1_137 = arith.constant 1 : index
    %c0_138 = arith.constant 0 : index
    %c0_139 = arith.constant 0 : index
    %383 = vector.load %arg18[%c1_137, %c0_138, %c0_139] : memref<4x8x32xf32, #tpu.memory_space<vmem>>, vector<1x8x32xf32>
    %384 = vector.shape_cast %383 : vector<1x8x32xf32> to vector<8x32xf32>
    %385 = vector.shape_cast %382 : vector<8x32xf32> to vector<1x8x32xf32>
    tpu.vector_store %arg18[%c1_137, %c0_138, %c0_139], %385 {strides = array<i32>} : memref<4x8x32xf32, #tpu.memory_space<vmem>>, vector<1x8x32xf32>,
    %c1_140 = arith.constant 1 : index
    %c0_141 = arith.constant 0 : index
    %c0_142 = arith.constant 0 : index
    %386 = vector.load %arg19[%c1_140, %c0_141, %c0_142] : memref<4x8x32xf32, #tpu.memory_space<vmem>>, vector<1x8x32xf32>
    %387 = vector.shape_cast %386 : vector<1x8x32xf32> to vector<8x32xf32>
    %388 = vector.shape_cast %351 : vector<8x32xf32> to vector<1x8x32xf32>
    tpu.vector_store %arg19[%c1_140, %c0_141, %c0_142], %388 {strides = array<i32>} : memref<4x8x32xf32, #tpu.memory_space<vmem>>, vector<1x8x32xf32>,
    %c0_143 = arith.constant 0 : index
    %c0_144 = arith.constant 0 : index
    %c0_145 = arith.constant 0 : index
    %389 = vector.load %arg17[%c0_143, %c0_144, %c0_145] : memref<8x8x32xf32, #tpu.memory_space<vmem>>, vector<8x8x32xf32>
    %390 = vector.shape_cast %382 : vector<8x32xf32> to vector<1x8x32xf32>
    %391 = vector.broadcast %390 : vector<1x8x32xf32> to vector<8x8x32xf32>
    %392 = arith.mulf %389, %391 : vector<8x8x32xf32>
    %cst_146 = arith.constant dense<0.000000e+00> : vector<8x8xf32>
    %393 = vector.multi_reduction <add>, %392, %cst_146 [2] : vector<8x8x32xf32> to vector<8x8xf32>
    %394 = vector.shape_cast %393 : vector<8x8xf32> to vector<8x8x1xf32>
    %cst_147 = arith.constant dense<0xFF800000> : vector<8x1xf32>
    %395 = vector.multi_reduction <maximumf>, %394, %cst_147 [0] : vector<8x8x1xf32> to vector<8x1xf32>
    %396 = vector.shape_cast %395 : vector<8x1xf32> to vector<1x8x1xf32>
    %397 = vector.broadcast %396 : vector<1x8x1xf32> to vector<8x8x1xf32>
    %398 = arith.subf %394, %397 : vector<8x8x1xf32>
    %399 = math.exp %398 : vector<8x8x1xf32>
    %cst_148 = arith.constant dense<0.000000e+00> : vector<8x1xf32>
    %400 = vector.multi_reduction <add>, %399, %cst_148 [0] : vector<8x8x1xf32> to vector<8x1xf32>
    %401 = vector.shape_cast %400 : vector<8x1xf32> to vector<1x8x1xf32>
    %402 = vector.broadcast %401 : vector<1x8x1xf32> to vector<8x8x1xf32>
    %403 = arith.divf %399, %402 : vector<8x8x1xf32>
    %404 = vector.broadcast %403 : vector<8x8x1xf32> to vector<8x8x32xf32>
    %405 = arith.mulf %404, %389 : vector<8x8x32xf32>
    %cst_149 = arith.constant dense<0.000000e+00> : vector<8x32xf32>
    %406 = vector.multi_reduction <add>, %405, %cst_149 [0] : vector<8x8x32xf32> to vector<8x32xf32>
    %c2_150 = arith.constant 2 : index
    %c0_151 = arith.constant 0 : index
    %c0_152 = arith.constant 0 : index
    %407 = vector.load %arg16[%c2_150, %c0_151, %c0_152] : memref<4x8x128xf32, #tpu.memory_space<vmem>>, vector<1x8x128xf32>
    %408 = vector.shape_cast %407 : vector<1x8x128xf32> to vector<8x128xf32>
    %cst_153 = arith.constant dense<0.000000e+00> : vector<8x128xf32>
    %409 = tpu.matmul %406, %277, %cst_153 {dimension_numbers = #tpu.dot_dimension_numbers<[1], [0], [0], [1], [0, 0, 1, 1], [], []>} : vector<8x32xf32>, vector<32x128xf32>, vector<8x128xf32> -> vector<8x128xf32>
    %410 = arith.addf %408, %409 : vector<8x128xf32>
    %cst_154 = arith.constant dense<0.000000e+00> : vector<8x128xf32>
    %411 = tpu.matmul %382, %278, %cst_154 {dimension_numbers = #tpu.dot_dimension_numbers<[1], [0], [0], [1], [0, 0, 1, 1], [], []>} : vector<8x32xf32>, vector<32x128xf32>, vector<8x128xf32> -> vector<8x128xf32>
    %412 = arith.addf %410, %411 : vector<8x128xf32>
    %413 = vector.extract_strided_slice %412 {offsets = [0, 0], sizes = [8, 32], strides = [1, 1]} : vector<8x128xf32> to vector<8x32xf32>
    %414 = arith.negf %413 : vector<8x32xf32>
    %415 = math.exp %414 : vector<8x32xf32>
    %cst_155 = arith.constant 1.000000e+00 : f32
    %416 = vector.broadcast %cst_155 : f32 to vector<8x32xf32>
    %417 = arith.addf %416, %415 : vector<8x32xf32>
    %418 = arith.divf %416, %417 : vector<8x32xf32>
    %419 = vector.extract_strided_slice %412 {offsets = [0, 32], sizes = [8, 32], strides = [1, 1]} : vector<8x128xf32> to vector<8x32xf32>
    %420 = arith.negf %419 : vector<8x32xf32>
    %421 = math.exp %420 : vector<8x32xf32>
    %cst_156 = arith.constant 1.000000e+00 : f32
    %422 = vector.broadcast %cst_156 : f32 to vector<8x32xf32>
    %423 = arith.addf %422, %421 : vector<8x32xf32>
    %424 = arith.divf %422, %423 : vector<8x32xf32>
    %425 = vector.extract_strided_slice %412 {offsets = [0, 64], sizes = [8, 32], strides = [1, 1]} : vector<8x128xf32> to vector<8x32xf32>
    %426 = math.tanh %425 : vector<8x32xf32>
    %427 = vector.extract_strided_slice %412 {offsets = [0, 96], sizes = [8, 32], strides = [1, 1]} : vector<8x128xf32> to vector<8x32xf32>
    %428 = arith.negf %427 : vector<8x32xf32>
    %429 = math.exp %428 : vector<8x32xf32>
    %cst_157 = arith.constant 1.000000e+00 : f32
    %430 = vector.broadcast %cst_157 : f32 to vector<8x32xf32>
    %431 = arith.addf %430, %429 : vector<8x32xf32>
    %432 = arith.divf %430, %431 : vector<8x32xf32>
    %433 = arith.mulf %424, %380 : vector<8x32xf32>
    %434 = arith.mulf %418, %426 : vector<8x32xf32>
    %435 = arith.addf %433, %434 : vector<8x32xf32>
    %436 = math.tanh %435 : vector<8x32xf32>
    %437 = arith.mulf %432, %436 : vector<8x32xf32>
    %c2_158 = arith.constant 2 : index
    %c0_159 = arith.constant 0 : index
    %c0_160 = arith.constant 0 : index
    %438 = vector.load %arg18[%c2_158, %c0_159, %c0_160] : memref<4x8x32xf32, #tpu.memory_space<vmem>>, vector<1x8x32xf32>
    %439 = vector.shape_cast %438 : vector<1x8x32xf32> to vector<8x32xf32>
    %440 = vector.shape_cast %437 : vector<8x32xf32> to vector<1x8x32xf32>
    tpu.vector_store %arg18[%c2_158, %c0_159, %c0_160], %440 {strides = array<i32>} : memref<4x8x32xf32, #tpu.memory_space<vmem>>, vector<1x8x32xf32>,
    %c2_161 = arith.constant 2 : index
    %c0_162 = arith.constant 0 : index
    %c0_163 = arith.constant 0 : index
    %441 = vector.load %arg19[%c2_161, %c0_162, %c0_163] : memref<4x8x32xf32, #tpu.memory_space<vmem>>, vector<1x8x32xf32>
    %442 = vector.shape_cast %441 : vector<1x8x32xf32> to vector<8x32xf32>
    %443 = vector.shape_cast %406 : vector<8x32xf32> to vector<1x8x32xf32>
    tpu.vector_store %arg19[%c2_161, %c0_162, %c0_163], %443 {strides = array<i32>} : memref<4x8x32xf32, #tpu.memory_space<vmem>>, vector<1x8x32xf32>,
    %c0_164 = arith.constant 0 : index
    %c0_165 = arith.constant 0 : index
    %c0_166 = arith.constant 0 : index
    %444 = vector.load %arg17[%c0_164, %c0_165, %c0_166] : memref<8x8x32xf32, #tpu.memory_space<vmem>>, vector<8x8x32xf32>
    %445 = vector.shape_cast %437 : vector<8x32xf32> to vector<1x8x32xf32>
    %446 = vector.broadcast %445 : vector<1x8x32xf32> to vector<8x8x32xf32>
    %447 = arith.mulf %444, %446 : vector<8x8x32xf32>
    %cst_167 = arith.constant dense<0.000000e+00> : vector<8x8xf32>
    %448 = vector.multi_reduction <add>, %447, %cst_167 [2] : vector<8x8x32xf32> to vector<8x8xf32>
    %449 = vector.shape_cast %448 : vector<8x8xf32> to vector<8x8x1xf32>
    %cst_168 = arith.constant dense<0xFF800000> : vector<8x1xf32>
    %450 = vector.multi_reduction <maximumf>, %449, %cst_168 [0] : vector<8x8x1xf32> to vector<8x1xf32>
    %451 = vector.shape_cast %450 : vector<8x1xf32> to vector<1x8x1xf32>
    %452 = vector.broadcast %451 : vector<1x8x1xf32> to vector<8x8x1xf32>
    %453 = arith.subf %449, %452 : vector<8x8x1xf32>
    %454 = math.exp %453 : vector<8x8x1xf32>
    %cst_169 = arith.constant dense<0.000000e+00> : vector<8x1xf32>
    %455 = vector.multi_reduction <add>, %454, %cst_169 [0] : vector<8x8x1xf32> to vector<8x1xf32>
    %456 = vector.shape_cast %455 : vector<8x1xf32> to vector<1x8x1xf32>
    %457 = vector.broadcast %456 : vector<1x8x1xf32> to vector<8x8x1xf32>
    %458 = arith.divf %454, %457 : vector<8x8x1xf32>
    %459 = vector.broadcast %458 : vector<8x8x1xf32> to vector<8x8x32xf32>
    %460 = arith.mulf %459, %444 : vector<8x8x32xf32>
    %cst_170 = arith.constant dense<0.000000e+00> : vector<8x32xf32>
    %461 = vector.multi_reduction <add>, %460, %cst_170 [0] : vector<8x8x32xf32> to vector<8x32xf32>
    %c3_171 = arith.constant 3 : index
    %c0_172 = arith.constant 0 : index
    %c0_173 = arith.constant 0 : index
    %462 = vector.load %arg16[%c3_171, %c0_172, %c0_173] : memref<4x8x128xf32, #tpu.memory_space<vmem>>, vector<1x8x128xf32>
    %463 = vector.shape_cast %462 : vector<1x8x128xf32> to vector<8x128xf32>
    %cst_174 = arith.constant dense<0.000000e+00> : vector<8x128xf32>
    %464 = tpu.matmul %461, %277, %cst_174 {dimension_numbers = #tpu.dot_dimension_numbers<[1], [0], [0], [1], [0, 0, 1, 1], [], []>} : vector<8x32xf32>, vector<32x128xf32>, vector<8x128xf32> -> vector<8x128xf32>
    %465 = arith.addf %463, %464 : vector<8x128xf32>
    %cst_175 = arith.constant dense<0.000000e+00> : vector<8x128xf32>
    %466 = tpu.matmul %437, %278, %cst_175 {dimension_numbers = #tpu.dot_dimension_numbers<[1], [0], [0], [1], [0, 0, 1, 1], [], []>} : vector<8x32xf32>, vector<32x128xf32>, vector<8x128xf32> -> vector<8x128xf32>
    %467 = arith.addf %465, %466 : vector<8x128xf32>
    %468 = vector.extract_strided_slice %467 {offsets = [0, 0], sizes = [8, 32], strides = [1, 1]} : vector<8x128xf32> to vector<8x32xf32>
    %469 = arith.negf %468 : vector<8x32xf32>
    %470 = math.exp %469 : vector<8x32xf32>
    %cst_176 = arith.constant 1.000000e+00 : f32
    %471 = vector.broadcast %cst_176 : f32 to vector<8x32xf32>
    %472 = arith.addf %471, %470 : vector<8x32xf32>
    %473 = arith.divf %471, %472 : vector<8x32xf32>
    %474 = vector.extract_strided_slice %467 {offsets = [0, 32], sizes = [8, 32], strides = [1, 1]} : vector<8x128xf32> to vector<8x32xf32>
    %475 = arith.negf %474 : vector<8x32xf32>
    %476 = math.exp %475 : vector<8x32xf32>
    %cst_177 = arith.constant 1.000000e+00 : f32
    %477 = vector.broadcast %cst_177 : f32 to vector<8x32xf32>
    %478 = arith.addf %477, %476 : vector<8x32xf32>
    %479 = arith.divf %477, %478 : vector<8x32xf32>
    %480 = vector.extract_strided_slice %467 {offsets = [0, 64], sizes = [8, 32], strides = [1, 1]} : vector<8x128xf32> to vector<8x32xf32>
    %481 = math.tanh %480 : vector<8x32xf32>
    %482 = vector.extract_strided_slice %467 {offsets = [0, 96], sizes = [8, 32], strides = [1, 1]} : vector<8x128xf32> to vector<8x32xf32>
    %483 = arith.negf %482 : vector<8x32xf32>
    %484 = math.exp %483 : vector<8x32xf32>
    %cst_178 = arith.constant 1.000000e+00 : f32
    %485 = vector.broadcast %cst_178 : f32 to vector<8x32xf32>
    %486 = arith.addf %485, %484 : vector<8x32xf32>
    %487 = arith.divf %485, %486 : vector<8x32xf32>
    %488 = arith.mulf %479, %435 : vector<8x32xf32>
    %489 = arith.mulf %473, %481 : vector<8x32xf32>
    %490 = arith.addf %488, %489 : vector<8x32xf32>
    %491 = math.tanh %490 : vector<8x32xf32>
    %492 = arith.mulf %487, %491 : vector<8x32xf32>
    %c3_179 = arith.constant 3 : index
    %c0_180 = arith.constant 0 : index
    %c0_181 = arith.constant 0 : index
    %493 = vector.load %arg18[%c3_179, %c0_180, %c0_181] : memref<4x8x32xf32, #tpu.memory_space<vmem>>, vector<1x8x32xf32>
    %494 = vector.shape_cast %493 : vector<1x8x32xf32> to vector<8x32xf32>
    %495 = vector.shape_cast %492 : vector<8x32xf32> to vector<1x8x32xf32>
    tpu.vector_store %arg18[%c3_179, %c0_180, %c0_181], %495 {strides = array<i32>} : memref<4x8x32xf32, #tpu.memory_space<vmem>>, vector<1x8x32xf32>,
    %c3_182 = arith.constant 3 : index
    %c0_183 = arith.constant 0 : index
    %c0_184 = arith.constant 0 : index
    %496 = vector.load %arg19[%c3_182, %c0_183, %c0_184] : memref<4x8x32xf32, #tpu.memory_space<vmem>>, vector<1x8x32xf32>
    %497 = vector.shape_cast %496 : vector<1x8x32xf32> to vector<8x32xf32>
    %498 = vector.shape_cast %461 : vector<8x32xf32> to vector<1x8x32xf32>
    tpu.vector_store %arg19[%c3_182, %c0_183, %c0_184], %498 {strides = array<i32>} : memref<4x8x32xf32, #tpu.memory_space<vmem>>, vector<1x8x32xf32>,
    %c0_185 = arith.constant 0 : index
    %c0_186 = arith.constant 0 : index
    %c0_187 = arith.constant 0 : index
    %499 = vector.load %arg14[%c0_185, %c0_186, %c0_187] : memref<8x8x1xf32, #tpu.memory_space<vmem>>, vector<8x8x1xf32>
    tpu.vector_store %arg14[%c0_185, %c0_186, %c0_187], %458 {strides = array<i32>} : memref<8x8x1xf32, #tpu.memory_space<vmem>>, vector<8x8x1xf32>,
    %c0_188 = arith.constant 0 : index
    %c0_189 = arith.constant 0 : index
    %c0_190 = arith.constant 0 : index
    %500 = vector.load %arg18[%c0_188, %c0_189, %c0_190] : memref<4x8x32xf32, #tpu.memory_space<vmem>>, vector<4x8x32xf32>
    %501 = vector.shape_cast %500 : vector<4x8x32xf32> to vector<32x32xf32>
    %c0_191 = arith.constant 0 : index
    %c0_192 = arith.constant 0 : index
    %502 = vector.load %arg10[%c0_191, %c0_192] : memref<32x2xf32, #tpu.memory_space<vmem>>, vector<32x2xf32>
    %cst_193 = arith.constant dense<0.000000e+00> : vector<32x2xf32>
    %503 = tpu.matmul %501, %502, %cst_193 {dimension_numbers = #tpu.dot_dimension_numbers<[1], [0], [0], [1], [0, 0, 1, 1], [], []>} : vector<32x32xf32>, vector<32x2xf32>, vector<32x2xf32> -> vector<32x2xf32>
    %c0_194 = arith.constant 0 : index
    %c0_195 = arith.constant 0 : index
    %c0_196 = arith.constant 0 : index
    %504 = vector.load %arg19[%c0_194, %c0_195, %c0_196] : memref<4x8x32xf32, #tpu.memory_space<vmem>>, vector<4x8x32xf32>
    %505 = vector.shape_cast %504 : vector<4x8x32xf32> to vector<32x32xf32>
    %c0_197 = arith.constant 0 : index
    %c0_198 = arith.constant 0 : index
    %506 = vector.load %arg11[%c0_197, %c0_198] : memref<32x2xf32, #tpu.memory_space<vmem>>, vector<32x2xf32>
    %cst_199 = arith.constant dense<0.000000e+00> : vector<32x2xf32>
    %507 = tpu.matmul %505, %506, %cst_199 {dimension_numbers = #tpu.dot_dimension_numbers<[1], [0], [0], [1], [0, 0, 1, 1], [], []>} : vector<32x32xf32>, vector<32x2xf32>, vector<32x2xf32> -> vector<32x2xf32>
    %508 = arith.addf %503, %507 : vector<32x2xf32>
    %c0_200 = arith.constant 0 : index
    %c0_201 = arith.constant 0 : index
    %509 = vector.load %arg12[%c0_200, %c0_201] : memref<1x2xf32, #tpu.memory_space<vmem>>, vector<1x2xf32>
    %510 = vector.broadcast %509 : vector<1x2xf32> to vector<32x2xf32>
    %511 = arith.addf %508, %510 : vector<32x2xf32>
    %512 = vector.shape_cast %511 : vector<32x2xf32> to vector<4x8x2xf32>
    %c0_202 = arith.constant 0 : index
    %c0_203 = arith.constant 0 : index
    %c0_204 = arith.constant 0 : index
    %513 = vector.load %arg13[%c0_202, %c0_203, %c0_204] : memref<4x8x2xf32, #tpu.memory_space<vmem>>, vector<4x8x2xf32>
    tpu.vector_store %arg13[%c0_202, %c0_203, %c0_204], %512 {strides = array<i32>} : memref<4x8x2xf32, #tpu.memory_space<vmem>>, vector<4x8x2xf32>,
    return
  }
  func.func @transform_0(%arg0: i32) -> (i32, i32, i32) {
    %c0_i32 = arith.constant 0 : i32
    %c0_i32_0 = arith.constant 0 : i32
    %c0_i32_1 = arith.constant 0 : i32
    return %c0_i32, %arg0, %c0_i32_0 : i32, i32, i32
  }
  func.func @transform_1(%arg0: i32) -> (i32, i32, i32) {
    %c0_i32 = arith.constant 0 : i32
    %c0_i32_0 = arith.constant 0 : i32
    %c0_i32_1 = arith.constant 0 : i32
    return %c0_i32, %arg0, %c0_i32_0 : i32, i32, i32
  }
  func.func @transform_2(%arg0: i32) -> (i32, i32) {
    %c0_i32 = arith.constant 0 : i32
    %c0_i32_0 = arith.constant 0 : i32
    %c0_i32_1 = arith.constant 0 : i32
    return %c0_i32, %c0_i32_0 : i32, i32
  }
  func.func @transform_3(%arg0: i32) -> (i32, i32) {
    %c0_i32 = arith.constant 0 : i32
    %c0_i32_0 = arith.constant 0 : i32
    %c0_i32_1 = arith.constant 0 : i32
    return %c0_i32, %c0_i32_0 : i32, i32
  }
  func.func @transform_4(%arg0: i32) -> (i32, i32) {
    %c0_i32 = arith.constant 0 : i32
    %c0_i32_0 = arith.constant 0 : i32
    %c0_i32_1 = arith.constant 0 : i32
    return %c0_i32, %c0_i32_0 : i32, i32
  }
  func.func @transform_5(%arg0: i32) -> (i32, i32) {
    %c0_i32 = arith.constant 0 : i32
    %c0_i32_0 = arith.constant 0 : i32
    %c0_i32_1 = arith.constant 0 : i32
    return %c0_i32, %c0_i32_0 : i32, i32
  }
  func.func @transform_6(%arg0: i32) -> (i32, i32) {
    %c0_i32 = arith.constant 0 : i32
    %c0_i32_0 = arith.constant 0 : i32
    %c0_i32_1 = arith.constant 0 : i32
    return %c0_i32, %c0_i32_0 : i32, i32
  }
  func.func @transform_7(%arg0: i32) -> (i32, i32) {
    %c0_i32 = arith.constant 0 : i32
    %c0_i32_0 = arith.constant 0 : i32
    %c0_i32_1 = arith.constant 0 : i32
    return %c0_i32, %c0_i32_0 : i32, i32
  }
  func.func @transform_8(%arg0: i32) -> (i32, i32) {
    %c0_i32 = arith.constant 0 : i32
    %c0_i32_0 = arith.constant 0 : i32
    %c0_i32_1 = arith.constant 0 : i32
    return %c0_i32, %c0_i32_0 : i32, i32
  }
  func.func @transform_9(%arg0: i32) -> (i32, i32) {
    %c0_i32 = arith.constant 0 : i32
    %c0_i32_0 = arith.constant 0 : i32
    %c0_i32_1 = arith.constant 0 : i32
    return %c0_i32, %c0_i32_0 : i32, i32
  }
  func.func @transform_10(%arg0: i32) -> (i32, i32) {
    %c0_i32 = arith.constant 0 : i32
    %c0_i32_0 = arith.constant 0 : i32
    %c0_i32_1 = arith.constant 0 : i32
    return %c0_i32, %c0_i32_0 : i32, i32
  }
  func.func @transform_11(%arg0: i32) -> (i32, i32) {
    %c0_i32 = arith.constant 0 : i32
    %c0_i32_0 = arith.constant 0 : i32
    %c0_i32_1 = arith.constant 0 : i32
    return %c0_i32, %c0_i32_0 : i32, i32
  }
  func.func @transform_12(%arg0: i32) -> (i32, i32, i32) {
    %c0_i32 = arith.constant 0 : i32
    %c0_i32_0 = arith.constant 0 : i32
    %c0_i32_1 = arith.constant 0 : i32
    return %c0_i32, %arg0, %c0_i32_0 : i32, i32, i32
  }
  func.func @transform_13(%arg0: i32) -> (i32, i32, i32) {
    %c0_i32 = arith.constant 0 : i32
    %c0_i32_0 = arith.constant 0 : i32
    %c0_i32_1 = arith.constant 0 : i32
    return %c0_i32, %arg0, %c0_i32_0 : i32, i32, i32
  }
}

</mosaic_0001>

<bundles_post_ra>
// kernel: seq2seq_with_attention.1
= control target key start
LH: loop header
LB: loop body
LE: loop exit
PB: predicated region body
PF: predicated region fallthrough
CT: control target
= control target key end

     0   :  { %vm84_vm0 = vcmask 1045504   ;;  %vm59_vm1 = vcmask 48128   ;;  %v3260_v7 = vmov 0.0|0.0   ;;  %vm3261_vm2 = vmmov 0   ;;  %s3264_s16 = smov 32   ;;  %s3893_s2 = inlined_call_operand.vmem [shape: f32[6,128], index: 2, kind: input, shape index: {}]   ;;  %s3894_s0 = inlined_call_operand.vmem [shape: f32[8,8,6], index: 0, kind: input, shape index: {}]   ;;  %s3895_s3 = inlined_call_operand.vmem [shape: f32[32,128], index: 3, kind: input, shape index: {}]   ;;  %s3896_s4 = inlined_call_operand.vmem [shape: f32[1,128], index: 4, kind: input, shape index: {}]   ;;  %s3897_s5 = inlined_call_operand.vmem [shape: f32[4,128], index: 5, kind: input, shape index: {}]   ;;  %s3898_s1 = inlined_call_operand.vmem [shape: f32[4,8,4], index: 1, kind: input, shape index: {}]   ;;  %s3899_s8 = inlined_call_operand.vmem [shape: f32[1,128], index: 8, kind: input, shape index: {}]   ;;  %s3900_s7 = inlined_call_operand.vmem [shape: f32[32,128], index: 7, kind: input, shape index: {}]   ;;  %s3901_s6 = inlined_call_operand.vmem [shape: f32[32,128], index: 6, kind: input, shape index: {}]   ;;  %s3902_s10 = inlined_call_operand.vmem [shape: f32[32,2], index: 10, kind: input, shape index: {}]   ;;  %s3903_s13 = inlined_call_operand.vmem [shape: f32[8,8,1], index: 13, kind: output, shape index: {1}]   ;;  %s3904_s9 = inlined_call_operand.vmem [shape: f32[32,2], index: 9, kind: input, shape index: {}]   ;;  %s3905_s11 = inlined_call_operand.vmem [shape: f32[1,2], index: 11, kind: input, shape index: {}]   ;;  %s3906_s12 = inlined_call_operand.vmem [shape: f32[4,8,2], index: 12, kind: output, shape index: {0}]  }
   0x1   :  { %v51_v0 = vld [vmem:[%s3893_s2] sm:$0x3f]  ;;  %v44_v2 = vld [vmem:[%s3894_s0 + $0x8] sm:$0xff]  ;;  %v45_v5 = vld [vmem:[%s3894_s0 + $0x10] sm:$0xff]  ;;  %v3262_v16 = vmov 0.0   ;;  %vm324_vm3 = vcmask 261120  }
   0x2   :  { %v43_v1 = vld [vmem:[%s3894_s0] sm:$0xff]  ;;  %2737 = vmatprep.subr.msk.mxu0 %vm84_vm0, %v51_v0  ;;  %v320_v4 = vld [vmem:[%s3895_s3 + $0x8] sm:$0xff]  ;;  %v321_v8 = vld [vmem:[%s3895_s3 + $0x10] sm:$0xff]  ;;  %vm226_vm4 = vcmask 1043456   ;;  %vm213_vm5 = vcmask 31744   ;;  %vm2332_vm6 = vcmask 7168  }
   0x3   :  { %2739 = vmatprep.mubr.msk.f32.mxu0 %vm59_vm1, %v43_v1  ;;  %v319_v3 = vld [vmem:[%s3895_s3] sm:$0xff]  ;;  %2738 = vmatpush3.msk.msra.mxu0 %vm84_vm0, %v51_v0  ;;  %v322_v9 = vld [vmem:[%s3895_s3 + $0x18] sm:$0xff]  ;;  %v48_v13 = vld [vmem:[%s3894_s0 + $0x28] sm:$0xff]  ;;  %vm2562_vm7 = vcmask 15360  }
   0x4   :  { %v3354_v6 = vpack.c.bf16 %v320_v4, %v319_v3  ;;  %2740 = vmatmul.mubr.msk.f32.vlgmr.msra.gmra.mrb[0].mxu0 %vm59_vm1, %v44_v2  ;;  %2963 = vmatprep.subr.bf16.mxu0 %v3260_v7  ;;  %v46_v10 = vld [vmem:[%s3894_s0 + $0x18] sm:$0xff]  ;;  %v3369_v11 = vpack.c.bf16 %v322_v9, %v321_v8  ;;  %v47_v12 = vld [vmem:[%s3894_s0 + $0x20] sm:$0xff]  ;;  %v49_v14 = vld [vmem:[%s3894_s0 + $0x30] sm:$0xff] }
   0x5   :  { %2742 = vmatprep.mubr.msk.f32.mxu0 %vm59_vm1, %v45_v5  ;;  %v50_v15 = vld [vmem:[%s3894_s0 + $0x38] sm:$0xff]  ;;  %v2575_v17 = vld [vmem:[%s3896_s4] ss:$0 sm:$0xff]  ;;  %s3263_s4 = smov 64   ;;  %v202_v2 = vld [vmem:[%s3898_s1 + $0x8] sm:$0xff] }
   0x6   :  { %2965 = vmatpush3.bf16.msra.mxu0 %v3354_v6  ;;  %v205_v0 = vld [vmem:[%s3897_s5] sm:$0xf]  ;;  %v203_v3 = vld [vmem:[%s3898_s1 + $0x10] sm:$0xff]  ;;  %v204_v4 = vld [vmem:[%s3898_s1 + $0x18] sm:$0xff] }
   0x7   :  { %2966 = vmatprep.subr.bf16.mxu0 %v3260_v7  ;;  %v201_v1 = vld [vmem:[%s3898_s1] sm:$0xff]  ;;  %2751 = vmatprep.subr.msk.mxu1 %vm226_vm4, %v205_v0 }
   0x8   :  { %2743 = vmatmul.mubr.msk.f32.gmra.mrb[2].mxu0 %vm59_vm1, %v46_v10  ;;  %2753 = vmatprep.mubr.msk.f32.mxu1 %vm213_vm5, %v201_v1  ;;  %v3456_v10 = vld [vmem:[%s3899_s8] ss:$0 sm:$0xff] }
   0x9   :  { %2745 = vmatprep.mubr.msk.f32.mxu0 %vm59_vm1, %v47_v12  ;;  %2752 = vmatpush3.msk.msra.mxu1 %vm226_vm4, %v205_v0 }
   0xa   :  { %2968 = vmatpush3.bf16.msra.mxu0 %v3369_v11  ;;  %2754 = vmatmul.mubr.msk.f32.vlgmr.msra.gmra.mrb[0].mxu1 %vm213_vm5, %v202_v2 }
   0xb   :  { %2969 = vmatprep.subr.bf16.mxu0 %v3260_v7  ;;  %2975 = vmatprep.subr.bf16.mxu1 %v3260_v7 }
   0xc   :  { %2746 = vmatmul.mubr.msk.f32.gmra.mrb[4].mxu0 %vm59_vm1, %v48_v13  ;;  %2977 = vmatpush3.bf16.msra.mxu1 %v3354_v6 }
   0xd   :  { %2748 = vmatprep.mubr.msk.f32.mxu0 %vm59_vm1, %v49_v14  ;;  %2756 = vmatprep.mubr.msk.f32.mxu1 %vm213_vm5, %v203_v3 }
   0xe   :  { %2978 = vmatprep.subr.bf16.mxu1 %v3260_v7  ;;  %2757 = vmatmul.mubr.msk.f32.gmra.mrb[2].mxu1 %vm213_vm5, %v204_v4 }
   0xf   :  { %2789 = vmatprep.mubr.msk.f32.mxu1 %vm3261_vm2, %v3262_v16 }
  0x10   :  { %2749 = vmatmul.mubr.msk.f32.gmra.mrb[6].mxu0 %vm59_vm1, %v50_v15  ;;  %2980 = vmatpush3.bf16.msra.mxu1 %v3369_v11 }
  0x11   :  { %2767 = vmatprep.mubr.msk.f32.mxu0 %vm3261_vm2, %v3262_v16  ;;  %2987 = vmatprep.subr.bf16.mxu1 %v3260_v7 }
  0x14   :  { %2768 = vmatmul.mubr.f32.vlgmr.msra.gmra.mrb[8].mxu0 %v3262_v16 }
  0x15   :  { %2971 = vmatpush3.bf16.msra.mxu0 %v3354_v6  ;;  %2778 = vmatprep.mubr.msk.f32.mxu0 %vm3261_vm2, %v3262_v16 }
  0x16   :  { %2972 = vmatprep.subr.bf16.mxu0 %v3260_v7 }
  0x19   :  { %2974 = vmatpush3.bf16.msra.mxu0 %v3369_v11 }
  0x1a   :  { %2981 = vmatprep.subr.bf16.mxu0 %v3260_v7 }
  0xd7   :  { %v2741_v18 = vpop.f32.mrb[0].mxu0 }
  0xd8   :  { %v160_v19 = vadd.f32 %v2741_v18, %v2575_v17  ;;  %v154_v20 = vpop.f32.mrb[1].mxu0 }
  0xd9   :  { %v155_v33 = vadd.f32 %v2575_v17, %v154_v20 }
  0xdb   :  { %v2744_v21 = vpop.f32.mrb[2].mxu0 }
  0xdc   :  { %v3403_v22 = vadd.f32 %v2744_v21, %v2575_v17  ;;  %v164_v23 = vpop.f32.mrb[3].mxu0 }
  0xdd   :  { %v3405_v24 = vadd.f32 %v2575_v17, %v164_v23  ;;  %v2755_v12 = vpop.f32.mrb[0].mxu1 }
  0xde   :  { %v3459_v13 = vadd.f32 %v2755_v12, %v3456_v10  ;;  %v3461_v14 = vpop.f32.mrb[1].mxu1 }
  0xdf   :  { %v2747_v25 = vpop.f32.mrb[4].mxu0 }
  0xe0   :  { %v3407_v26 = vadd.f32 %v2747_v25, %v2575_v17  ;;  %v174_v27 = vpop.f32.mrb[5].mxu0 }
  0xe1   :  { %v3409_v28 = vadd.f32 %v2575_v17, %v174_v27  ;;  %v2758_v15 = vpop.f32.mrb[2].mxu1 }
  0xe2   :  { %v306_v18 = vpop.f32.mrb[3].mxu1 }
  0xe3   :  { %v2750_v29 = vpop.f32.mrb[6].mxu0 }
  0xe4   :  { %v3411_v30 = vadd.f32 %v2750_v29, %v2575_v17  ;;  %v184_v31 = vpop.f32.mrb[7].mxu0 }
  0xe5   :  { %v3413_v32 = vadd.f32 %v2575_v17, %v184_v31  ;;  %v3464_v17 = vadd.f32 %v2758_v15, %v3456_v10 }
  0xe7   :  { %v394_v34 = vpop.f32.mrb[8].mxu0 }
  0xe8   :  { %v398_v35 = vadd.f32 %v394_v34, %v155_v33  ;;  %v2769_v36 = vpop.f32.mrb[9].mxu0 }
  0xea   :  { %3084 = vtanh.f32 %v398_v35  ;;  %v2591_v38 = vmul.f32 -1.442695, %v398_v35 }
  0xec   :  { %3086 = vpow2.f32 %v2591_v38 }
  0xf4   :  { %v3085_v37 = vpop.eup %3084 }
  0xf5   :  { %408 = vrot.lane.b32.xlu0 %v3085_v37, %s3263_s4 }
  0xf6   :  { %v3087_v39 = vpop.eup %3086 }
  0xf7   :  { %v402_v40 = vadd.f32 1.0, %v3087_v39 }
  0xf9   :  { %3088 = vrcp.f32 %v402_v40 }
 0x103   :  { %v3089_v41 = vpop.eup %3088 }
 0x104   :  { %v406_v44 = vmul.f32 0.0, %v3089_v41 }
 0x167   :  { %v409_v42 = vpop.permute.xlu0 %408 }
 0x168   :  { %v411_v43 = vmul.f32 %v3089_v41, %v409_v42 }
 0x16a   :  { %413 = vrot.lane.b32.xlu0 %v411_v43, %s3264_s16 }
 0x1dc   :  { %v414_v45 = vpop.permute.xlu0 %413 }
 0x1dd   :  { %v416_v46 = vadd.f32 %v414_v45, %v406_v44 }
 0x1df   :  { %3090 = vtanh.f32 %v416_v46 }
 0x1e9   :  { %v3091_v47 = vpop.eup %3090 }
 0x1ea   :  { %419 = vrot.lane.b32.xlu1 %v3091_v47, %s3263_s4 }
 0x25c   :  { %v420_v48 = vpop.permute.xlu1 %419 }
 0x25d   :  { %v422_v49 = vmul.f32 %v3089_v41, %v420_v48 }
 0x25f   :  { %424 = vrot.lane.b32.xlu1 %v422_v49, %s3264_s16 }
 0x2d1   :  { %v425_v50 = vpop.permute.xlu1 %424 }
 0x2d2   :  { %427 = vst.msk [vmem:[#allocation4] sm:$0xff] %vm324_vm3, %v425_v50  ;;  %2779 = vmatmul.mubr.msk.f32.vlgmr.msra.gmra.mrb[10].mxu0 %vm324_vm3, %v425_v50 }
 0x2d3   :  { %2983 = vmatpush3.bf16.msra.mxu0 %v3354_v6  ;;  %2800 = vmatprep.mubr.msk.f32.mxu0 %vm3261_vm2, %v3262_v16 }
 0x2d4   :  { %2984 = vmatprep.subr.bf16.mxu0 %v3260_v7 }
 0x2d7   :  { %2986 = vmatpush3.bf16.msra.mxu0 %v3369_v11 }
 0x2d8   :  { %2993 = vmatprep.subr.bf16.mxu0 %v3260_v7 }
 0x3a5   :  { %v498_v51 = vpop.f32.mrb[10].mxu0 }
 0x3a6   :  { %v502_v52 = vadd.f32 %v498_v51, %v160_v19  ;;  %v2780_v53 = vpop.f32.mrb[11].mxu0  ;;  %v3467_v19 = vadd.f32 %v3456_v10, %v306_v18 }
 0x3a8   :  { %3092 = vtanh.f32 %v502_v52  ;;  %v2593_v55 = vmul.f32 -1.442695, %v502_v52 }
 0x3aa   :  { %3094 = vpow2.f32 %v2593_v55 }
 0x3b2   :  { %v3093_v54 = vpop.eup %3092 }
 0x3b3   :  { %512 = vrot.lane.b32.xlu0 %v3093_v54, %s3263_s4 }
 0x3b4   :  { %v3095_v56 = vpop.eup %3094 }
 0x3b5   :  { %v506_v57 = vadd.f32 1.0, %v3095_v56 }
 0x3b7   :  { %3096 = vrcp.f32 %v506_v57 }
 0x3c1   :  { %v3097_v58 = vpop.eup %3096 }
 0x3c2   :  { %v510_v61 = vmul.f32 %v3097_v58, %v416_v46 }
 0x425   :  { %v513_v59 = vpop.permute.xlu0 %512 }
 0x426   :  { %v515_v60 = vmul.f32 %v3097_v58, %v513_v59 }
 0x428   :  { %517 = vrot.lane.b32.xlu1 %v515_v60, %s3264_s16 }
 0x49a   :  { %v518_v62 = vpop.permute.xlu1 %517 }
 0x49b   :  { %v520_v63 = vadd.f32 %v518_v62, %v510_v61 }
 0x49d   :  { %3098 = vtanh.f32 %v520_v63 }
 0x4a7   :  { %v3099_v5 = vpop.eup %3098 }
 0x4a8   :  { %523 = vrot.lane.b32.xlu0 %v3099_v5, %s3263_s4 }
 0x51a   :  { %v524_v8 = vpop.permute.xlu0 %523 }
 0x51b   :  { %v526_v9 = vmul.f32 %v3097_v58, %v524_v8 }
 0x51d   :  { %528 = vrot.lane.b32.xlu1 %v526_v9, %s3264_s16 }
 0x58f   :  { %v529_v20 = vpop.permute.xlu1 %528 }
 0x590   :  { %532 = vst.msk [vmem:[#allocation4 + $0x8] sm:$0xff] %vm324_vm3, %v529_v20  ;;  %2790 = vmatmul.mubr.msk.f32.vlgmr.msra.gmra.mrb[4].mxu1 %vm324_vm3, %v529_v20 }
 0x591   :  { %2989 = vmatpush3.bf16.msra.mxu1 %v3354_v6  ;;  %2811 = vmatprep.mubr.msk.f32.mxu1 %vm3261_vm2, %v3262_v16 }
 0x592   :  { %2990 = vmatprep.subr.bf16.mxu1 %v3260_v7 }
 0x595   :  { %2992 = vmatpush3.bf16.msra.mxu1 %v3369_v11 }
 0x596   :  { %2999 = vmatprep.subr.bf16.mxu1 %v3260_v7 }
 0x663   :  { %v603_v21 = vpop.f32.mrb[4].mxu1 }
 0x664   :  { %v607_v23 = vadd.f32 %v603_v21, %v3405_v24  ;;  %v2791_v25 = vpop.f32.mrb[5].mxu1 }
 0x666   :  { %3100 = vtanh.f32 %v607_v23  ;;  %v2595_v29 = vmul.f32 -1.442695, %v607_v23 }
 0x668   :  { %3102 = vpow2.f32 %v2595_v29 }
 0x670   :  { %v3101_v27 = vpop.eup %3100 }
 0x671   :  { %617 = vrot.lane.b32.xlu0 %v3101_v27, %s3263_s4 }
 0x672   :  { %v3103_v31 = vpop.eup %3102 }
 0x673   :  { %v611_v33 = vadd.f32 1.0, %v3103_v31 }
 0x675   :  { %3104 = vrcp.f32 %v611_v33 }
 0x67f   :  { %v3105_v34 = vpop.eup %3104 }
 0x680   :  { %v615_v37 = vmul.f32 %v3105_v34, %v520_v63 }
 0x6e3   :  { %v618_v35 = vpop.permute.xlu0 %617 }
 0x6e4   :  { %v620_v36 = vmul.f32 %v3105_v34, %v618_v35 }
 0x6e6   :  { %622 = vrot.lane.b32.xlu1 %v620_v36, %s3264_s16 }
 0x758   :  { %v623_v38 = vpop.permute.xlu1 %622 }
 0x759   :  { %v625_v39 = vadd.f32 %v623_v38, %v615_v37 }
 0x75b   :  { %3106 = vtanh.f32 %v625_v39 }
 0x765   :  { %v3107_v24 = vpop.eup %3106 }
 0x766   :  { %628 = vrot.lane.b32.xlu0 %v3107_v24, %s3263_s4 }
 0x7d8   :  { %v629_v40 = vpop.permute.xlu0 %628 }
 0x7d9   :  { %v631_v41 = vmul.f32 %v3105_v34, %v629_v40 }
 0x7db   :  { %633 = vrot.lane.b32.xlu1 %v631_v41, %s3264_s16 }
 0x84d   :  { %v634_v42 = vpop.permute.xlu1 %633 }
 0x84e   :  { %637 = vst.msk [vmem:[#allocation4 + $0x10] sm:$0xff] %vm324_vm3, %v634_v42  ;;  %2801 = vmatmul.mubr.msk.f32.vlgmr.msra.gmra.mrb[12].mxu0 %vm324_vm3, %v634_v42 }
 0x84f   :  { %2995 = vmatpush3.bf16.msra.mxu0 %v3354_v6  ;;  %2822 = vmatprep.mubr.msk.f32.mxu0 %vm3261_vm2, %v3262_v16 }
 0x850   :  { %2996 = vmatprep.subr.bf16.mxu0 %v3260_v7 }
 0x853   :  { %2998 = vmatpush3.bf16.msra.mxu0 %v3369_v11 }
 0x854   :  { %3005 = vmatprep.subr.bf16.mxu0 %v3260_v7 }
 0x921   :  { %v708_v43 = vpop.f32.mrb[12].mxu0 }
 0x922   :  { %v712_v44 = vadd.f32 %v708_v43, %v3403_v22  ;;  %v2802_v45 = vpop.f32.mrb[13].mxu0 }
 0x924   :  { %3108 = vtanh.f32 %v712_v44  ;;  %v2597_v47 = vmul.f32 -1.442695, %v712_v44 }
 0x926   :  { %3110 = vpow2.f32 %v2597_v47 }
 0x92e   :  { %v3109_v46 = vpop.eup %3108 }
 0x92f   :  { %722 = vrot.lane.b32.xlu0 %v3109_v46, %s3263_s4 }
 0x930   :  { %v3111_v48 = vpop.eup %3110 }
 0x931   :  { %v716_v49 = vadd.f32 1.0, %v3111_v48 }
 0x933   :  { %3112 = vrcp.f32 %v716_v49 }
 0x93d   :  { %v3113_v50 = vpop.eup %3112 }
 0x93e   :  { %v720_v53 = vmul.f32 %v3113_v50, %v625_v39 }
 0x9a1   :  { %v723_v51 = vpop.permute.xlu0 %722 }
 0x9a2   :  { %v725_v52 = vmul.f32 %v3113_v50, %v723_v51 }
 0x9a4   :  { %727 = vrot.lane.b32.xlu1 %v725_v52, %s3264_s16 }
 0xa16   :  { %v728_v54 = vpop.permute.xlu1 %727 }
 0xa17   :  { %v730_v55 = vadd.f32 %v728_v54, %v720_v53 }
 0xa19   :  { %3114 = vtanh.f32 %v730_v55 }
 0xa23   :  { %v3115_v22 = vpop.eup %3114 }
 0xa24   :  { %733 = vrot.lane.b32.xlu0 %v3115_v22, %s3263_s4 }
 0xa96   :  { %v734_v56 = vpop.permute.xlu0 %733 }
 0xa97   :  { %v736_v57 = vmul.f32 %v3113_v50, %v734_v56 }
 0xa99   :  { %738 = vrot.lane.b32.xlu1 %v736_v57, %s3264_s16 }
 0xb0b   :  { %v739_v58 = vpop.permute.xlu1 %738 }
 0xb0c   :  { %742 = vst.msk [vmem:[#allocation4 + $0x18] sm:$0xff] %vm324_vm3, %v739_v58  ;;  %2812 = vmatmul.mubr.msk.f32.vlgmr.msra.gmra.mrb[6].mxu1 %vm324_vm3, %v739_v58 }
 0xb0d   :  { %3001 = vmatpush3.bf16.msra.mxu1 %v3354_v6  ;;  %2833 = vmatprep.mubr.msk.f32.mxu1 %vm3261_vm2, %v3262_v16 }
 0xb0e   :  { %3002 = vmatprep.subr.bf16.mxu1 %v3260_v7 }
 0xb11   :  { %3004 = vmatpush3.bf16.msra.mxu1 %v3369_v11 }
 0xb12   :  { %3011 = vmatprep.subr.bf16.mxu1 %v3260_v7 }
 0xbdf   :  { %v813_v59 = vpop.f32.mrb[6].mxu1 }
 0xbe0   :  { %v817_v60 = vadd.f32 %v813_v59, %v3409_v28  ;;  %v2813_v61 = vpop.f32.mrb[7].mxu1 }
 0xbe2   :  { %3116 = vtanh.f32 %v817_v60  ;;  %v2599_v63 = vmul.f32 -1.442695, %v817_v60 }
 0xbe4   :  { %3118 = vpow2.f32 %v2599_v63 }
 0xbec   :  { %v3117_v62 = vpop.eup %3116 }
 0xbed   :  { %827 = vrot.lane.b32.xlu0 %v3117_v62, %s3263_s4 }
 0xbee   :  { %v3119_v0 = vpop.eup %3118 }
 0xbef   :  { %v821_v1 = vadd.f32 1.0, %v3119_v0 }
 0xbf1   :  { %3120 = vrcp.f32 %v821_v1 }
 0xbfb   :  { %v3121_v2 = vpop.eup %3120 }
 0xbfc   :  { %v825_v5 = vmul.f32 %v3121_v2, %v730_v55 }
 0xc5f   :  { %v828_v3 = vpop.permute.xlu0 %827 }
 0xc60   :  { %v830_v4 = vmul.f32 %v3121_v2, %v828_v3  ;;  %v1168_v3 = vld [vmem:[%s3900_s7 + $0x8] sm:$0xff] }
 0xc62   :  { %832 = vrot.lane.b32.xlu1 %v830_v4, %s3264_s16  ;;  %v1169_v4 = vld [vmem:[%s3900_s7 + $0x10] sm:$0xff] }
 0xcd4   :  { %v833_v8 = vpop.permute.xlu1 %832 }
 0xcd5   :  { %v835_v9 = vadd.f32 %v833_v8, %v825_v5  ;;  %v1170_v8 = vld [vmem:[%s3900_s7 + $0x18] sm:$0xff] }
 0xcd7   :  { %3122 = vtanh.f32 %v835_v9 }
 0xce1   :  { %v3123_v28 = vpop.eup %3122 }
 0xce2   :  { %838 = vrot.lane.b32.xlu0 %v3123_v28, %s3263_s4 }
 0xd54   :  { %v839_v12 = vpop.permute.xlu0 %838 }
 0xd55   :  { %v841_v15 = vmul.f32 %v3121_v2, %v839_v12 }
 0xd57   :  { %843 = vrot.lane.b32.xlu1 %v841_v15, %s3264_s16 }
 0xdc9   :  { %v844_v18 = vpop.permute.xlu1 %843 }
 0xdca   :  { %847 = vst.msk [vmem:[#allocation4 + $0x20] sm:$0xff] %vm324_vm3, %v844_v18  ;;  %2823 = vmatmul.mubr.msk.f32.vlgmr.msra.gmra.mrb[14].mxu0 %vm324_vm3, %v844_v18 }
 0xdcb   :  { %3007 = vmatpush3.bf16.msra.mxu0 %v3354_v6  ;;  %2844 = vmatprep.mubr.msk.f32.mxu0 %vm3261_vm2, %v3262_v16 }
 0xdcc   :  { %3008 = vmatprep.subr.bf16.mxu0 %v3260_v7 }
 0xdcf   :  { %3010 = vmatpush3.bf16.msra.mxu0 %v3369_v11 }
 0xdd0   :  { %3017 = vmatprep.subr.bf16.mxu0 %v3260_v7 }
 0xe9d   :  { %v918_v20 = vpop.f32.mrb[14].mxu0 }
 0xe9e   :  { %v922_v21 = vadd.f32 %v918_v20, %v3407_v26  ;;  %v2824_v23 = vpop.f32.mrb[15].mxu0  ;;  %v3562_v20 = vld [vmem:[#allocation4 + $0x8] sm:$0xff] }
 0xea0   :  { %3124 = vtanh.f32 %v922_v21  ;;  %v2601_v27 = vmul.f32 -1.442695, %v922_v21  ;;  %v3564_v21 = vld [vmem:[#allocation4] sm:$0xff] }
 0xea2   :  { %3126 = vpow2.f32 %v2601_v27  ;;  %v3570_v27 = vld [vmem:[#allocation4 + $0x20] sm:$0xff] }
 0xeaa   :  { %v3125_v25 = vpop.eup %3124 }
 0xeab   :  { %932 = vrot.lane.b32.xlu0 %v3125_v25, %s3263_s4 }
 0xeac   :  { %v3127_v6 = vpop.eup %3126 }
 0xead   :  { %v926_v29 = vadd.f32 1.0, %v3127_v6  ;;  %v3572_v6 = vld [vmem:[#allocation4 + $0x10] sm:$0xff] }
 0xeaf   :  { %3128 = vrcp.f32 %v926_v29 }
 0xeb9   :  { %v3129_v31 = vpop.eup %3128 }
 0xeba   :  { %v930_v11 = vmul.f32 %v3129_v31, %v835_v9  ;;  %v3555_v9 = vpack.c.bf16 %v1170_v8, %v1169_v4 }
 0xf1d   :  { %v933_v33 = vpop.permute.xlu0 %932 }
 0xf1e   :  { %v935_v34 = vmul.f32 %v3129_v31, %v933_v33 }
 0xf20   :  { %937 = vrot.lane.b32.xlu1 %v935_v34, %s3264_s16 }
 0xf92   :  { %v938_v35 = vpop.permute.xlu1 %937 }
 0xf93   :  { %v940_v36 = vadd.f32 %v938_v35, %v930_v11  ;;  %v3584_v35 = vld [vmem:[#allocation4 + $0x18] sm:$0xff] }
 0xf95   :  { %3130 = vtanh.f32 %v940_v36 }
 0xf9f   :  { %v3131_v26 = vpop.eup %3130 }
 0xfa0   :  { %943 = vrot.lane.b32.xlu0 %v3131_v26, %s3263_s4 }
0x1012   :  { %v944_v37 = vpop.permute.xlu0 %943 }
0x1013   :  { %v946_v38 = vmul.f32 %v3129_v31, %v944_v37 }
0x1015   :  { %948 = vrot.lane.b32.xlu1 %v946_v38, %s3264_s16 }
0x1087   :  { %v949_v39 = vpop.permute.xlu1 %948 }
0x1088   :  { %952 = vst.msk [vmem:[#allocation4 + $0x28] sm:$0xff] %vm324_vm3, %v949_v39  ;;  %2834 = vmatmul.mubr.msk.f32.vlgmr.msra.gmra.mrb[8].mxu1 %vm324_vm3, %v949_v39 }
0x1089   :  { %2855 = vmatprep.mubr.msk.f32.mxu1 %vm3261_vm2, %v3262_v16 }
0x108f   :  { %v3592_v39 = vld [vmem:[#allocation4 + $0x28] sm:$0xff] }
0x115b   :  { %v1023_v24 = vpop.f32.mrb[8].mxu1 }
0x115c   :  { %v1027_v40 = vadd.f32 %v1023_v24, %v3413_v32  ;;  %v2835_v41 = vpop.f32.mrb[9].mxu1 }
0x115e   :  { %3132 = vtanh.f32 %v1027_v40  ;;  %v2603_v43 = vmul.f32 -1.442695, %v1027_v40 }
0x1160   :  { %3134 = vpow2.f32 %v2603_v43 }
0x1168   :  { %v3133_v42 = vpop.eup %3132 }
0x1169   :  { %1037 = vrot.lane.b32.xlu0 %v3133_v42, %s3263_s4 }
0x116a   :  { %v3135_v44 = vpop.eup %3134 }
0x116b   :  { %v1031_v45 = vadd.f32 1.0, %v3135_v44 }
0x116d   :  { %3136 = vrcp.f32 %v1031_v45 }
0x1177   :  { %v3137_v46 = vpop.eup %3136 }
0x1178   :  { %v1035_v49 = vmul.f32 %v3137_v46, %v940_v36 }
0x11db   :  { %v1038_v47 = vpop.permute.xlu0 %1037 }
0x11dc   :  { %v1040_v48 = vmul.f32 %v3137_v46, %v1038_v47  ;;  %v1164_v47 = vld [vmem:[%s3901_s6 + $0x8] sm:$0xff] }
0x11de   :  { %1042 = vrot.lane.b32.xlu1 %v1040_v48, %s3264_s16  ;;  %v1165_v48 = vld [vmem:[%s3901_s6 + $0x10] sm:$0xff] }
0x1250   :  { %v1043_v50 = vpop.permute.xlu1 %1042 }
0x1251   :  { %v1045_v51 = vadd.f32 %v1043_v50, %v1035_v49  ;;  %v1166_v50 = vld [vmem:[%s3901_s6 + $0x18] sm:$0xff] }
0x1253   :  { %3138 = vtanh.f32 %v1045_v51 }
0x125d   :  { %v3139_v32 = vpop.eup %3138 }
0x125e   :  { %1048 = vrot.lane.b32.xlu0 %v3139_v32, %s3263_s4 }
0x12d0   :  { %v1049_v52 = vpop.permute.xlu0 %1048 }
0x12d1   :  { %v1051_v53 = vmul.f32 %v3137_v46, %v1049_v52  ;;  %v1163_v46 = vld [vmem:[%s3901_s6] sm:$0xff] }
0x12d2   :  { %v3611_v49 = vpack.c.bf16 %v1164_v47, %v1163_v46 }
0x12d3   :  { %1053 = vrot.lane.b32.xlu1 %v1051_v53, %s3264_s16 }
0x12d4   :  { %3013 = vmatpush3.bf16.msra.mxu1 %v3611_v49 }
0x12d5   :  { %3014 = vmatprep.subr.bf16.mxu1 %v3260_v7 }
0x1345   :  { %v1054_v54 = vpop.permute.xlu1 %1053 }
0x1346   :  { %1057 = vst.msk [vmem:[#allocation4 + $0x30] sm:$0xff] %vm324_vm3, %v1054_v54  ;;  %2845 = vmatmul.mubr.msk.f32.vlgmr.msra.gmra.mrb[16].mxu0 %vm324_vm3, %v1054_v54 }
0x1347   :  { %2866 = vmatprep.mubr.msk.f32.mxu0 %vm3261_vm2, %v3262_v16 }
0x134d   :  { %v3582_v11 = vld [vmem:[#allocation4 + $0x30] sm:$0xff] }
0x1419   :  { %v1128_v55 = vpop.f32.mrb[16].mxu0 }
0x141a   :  { %v1132_v22 = vadd.f32 %v1128_v55, %v3411_v30  ;;  %v2846_v56 = vpop.f32.mrb[17].mxu0  ;;  %v1167_v30 = vld [vmem:[%s3900_s7] sm:$0xff] }
0x141b   :  { %v3549_v5 = vpack.c.bf16 %v1168_v3, %v1167_v30 }
0x141c   :  { %3140 = vtanh.f32 %v1132_v22  ;;  %v2605_v58 = vmul.f32 -1.442695, %v1132_v22 }
0x141d   :  { %3019 = vmatpush3.bf16.msra.mxu0 %v3549_v5 }
0x141e   :  { %3142 = vpow2.f32 %v2605_v58  ;;  %3020 = vmatprep.subr.bf16.mxu0 %v3260_v7 }
0x1421   :  { %3022 = vmatpush3.bf16.msra.mxu0 %v3555_v9 }
0x1422   :  { %3029 = vmatprep.subr.bf16.mxu0 %v3260_v7 }
0x1426   :  { %v3141_v57 = vpop.eup %3140 }
0x1427   :  { %1142 = vrot.lane.b32.xlu0 %v3141_v57, %s3263_s4 }
0x1428   :  { %v3143_v59 = vpop.eup %3142 }
0x1429   :  { %v1136_v60 = vadd.f32 1.0, %v3143_v59 }
0x142b   :  { %3144 = vrcp.f32 %v1136_v60 }
0x1435   :  { %v3145_v61 = vpop.eup %3144 }
0x1436   :  { %v1140_v0 = vmul.f32 %v3145_v61, %v1045_v51  ;;  %v3617_v51 = vpack.c.bf16 %v1166_v50, %v1165_v48 }
0x1438   :  { %3016 = vmatpush3.bf16.msra.mxu1 %v3617_v51 }
0x1439   :  { %3023 = vmatprep.subr.bf16.mxu1 %v3260_v7 }
0x1499   :  { %v1143_v62 = vpop.permute.xlu0 %1142 }
0x149a   :  { %v1145_v63 = vmul.f32 %v3145_v61, %v1143_v62 }
0x149c   :  { %1147 = vrot.lane.b32.xlu1 %v1145_v63, %s3264_s16 }
0x150e   :  { %v1148_v1 = vpop.permute.xlu1 %1147 }
0x150f   :  { %v3537_v2 = vadd.f32 %v1148_v1, %v1140_v0 }
0x1511   :  { %3146 = vtanh.f32 %v3537_v2 }
0x151b   :  { %v3147_v28 = vpop.eup %3146 }
0x151c   :  { %1153 = vrot.lane.b32.xlu0 %v3147_v28, %s3263_s4 }
0x158e   :  { %v1154_v12 = vpop.permute.xlu0 %1153 }
0x158f   :  { %v1156_v15 = vmul.f32 %v3145_v61, %v1154_v12 }
0x1591   :  { %1158 = vrot.lane.b32.xlu1 %v1156_v15, %s3264_s16 }
0x1603   :  { %v1159_v18 = vpop.permute.xlu1 %1158 }
0x1604   :  { %1162 = vst.msk [vmem:[#allocation4 + $0x38] sm:$0xff] %vm324_vm3, %v1159_v18  ;;  %2867 = vmatmul.mubr.msk.f32.vlgmr.msra.gmra.mrb[18].mxu0 %vm324_vm3, %v1159_v18  ;;  %v1180_v23 = vmul.f32 %v3562_v20, %v1159_v18  ;;  %v1179_v25 = vmul.f32 %v3564_v21, %v1159_v18  ;;  %v1183_v33 = vmul.f32 %v3570_v27, %v1159_v18 }
0x1605   :  { %3031 = vmatpush3.bf16.msra.mxu0 %v3549_v5  ;;  %2888 = vmatprep.mubr.msk.f32.mxu0 %vm3261_vm2, %v3262_v16  ;;  %v1181_v34 = vmul.f32 %v3572_v6, %v1159_v18  ;;  %v1185_v37 = vmul.f32 %v3582_v11, %v1159_v18  ;;  %v1182_v38 = vmul.f32 %v3584_v35, %v1159_v18 }
0x1606   :  { %v1190_v29 = vsel %vm324_vm3, %v1180_v23, 0.0  ;;  %v1187_v31 = vsel %vm324_vm3, %v1179_v25, 0.0  ;;  %3032 = vmatprep.subr.bf16.mxu0 %v3260_v7  ;;  %v1199_v36 = vsel %vm324_vm3, %v1183_v33, 0.0  ;;  %v1184_v41 = vmul.f32 %v3592_v39, %v1159_v18 }
0x1607   :  { %1191 = vadd.xlane.f32.xlu1 %v1190_v29  ;;  %1188 = vadd.xlane.f32.xlu0 %v1187_v31  ;;  %v1193_v26 = vsel %vm324_vm3, %v1181_v34, 0.0  ;;  %v1205_v24 = vsel %vm324_vm3, %v1185_v37, 0.0  ;;  %v1196_v40 = vsel %vm324_vm3, %v1182_v38, 0.0 }
0x1608   :  { %v1202_v43 = vsel %vm324_vm3, %v1184_v41, 0.0 }
0x1609   :  { %3034 = vmatpush3.bf16.msra.mxu0 %v3555_v9 }
0x160a   :  { %3041 = vmatprep.subr.bf16.mxu0 %v3260_v7 }
0x160b   :  { %1200 = vadd.xlane.f32.xlu1 %v1199_v36  ;;  %1194 = vadd.xlane.f32.xlu0 %v1193_v26  ;;  %v3597_v42 = vld [vmem:[#allocation4 + $0x38] sm:$0xff] }
0x160c   :  { %v1186_v44 = vmul.f32 %v3597_v42, %v1159_v18 }
0x160e   :  { %v1208_v45 = vsel %vm324_vm3, %v1186_v44, 0.0 }
0x160f   :  { %1206 = vadd.xlane.f32.xlu1 %v1205_v24  ;;  %1197 = vadd.xlane.f32.xlu0 %v1196_v40 }
0x1613   :  { %1203 = vadd.xlane.f32.xlu0 %v1202_v43 }
0x1617   :  { %1209 = vadd.xlane.f32.xlu0 %v1208_v45 }
0x1694   :  { %v1189_v32 = vpop.xlane.xlu0 %1188  ;;  %v1192_v52 = vpop.xlane.xlu1 %1191 }
0x1698   :  { %v1195_v53 = vpop.xlane.xlu0 %1194  ;;  %v1201_v54 = vpop.xlane.xlu1 %1200 }
0x1699   :  { %v1211_v59 = vmax.f32 %v1189_v32, %v1201_v54 }
0x169c   :  { %v1198_v55 = vpop.xlane.xlu0 %1197  ;;  %v1207_v56 = vpop.xlane.xlu1 %1206 }
0x169d   :  { %v1213_v60 = vmax.f32 %v1195_v53, %v1207_v56 }
0x16a0   :  { %v1204_v22 = vpop.xlane.xlu0 %1203 }
0x16a1   :  { %v1212_v57 = vmax.f32 %v1192_v52, %v1204_v22 }
0x16a3   :  { %v1215_v62 = vmax.f32 %v1211_v59, %v1212_v57 }
0x16a4   :  { %v1210_v58 = vpop.xlane.xlu0 %1209 }
0x16a5   :  { %v1214_v61 = vmax.f32 %v1198_v55, %v1210_v58 }
0x16a7   :  { %v1216_v63 = vmax.f32 %v1213_v60, %v1214_v61 }
0x16a9   :  { %v1217_v0 = vmax.f32 %v1215_v62, %v1216_v63 }
0x16ab   :  { %v1218_v1 = vsub.f32 %v1189_v32, %v1217_v0  ;;  %v1219_v30 = vsub.f32 %v1192_v52, %v1217_v0  ;;  %v1220_v3 = vsub.f32 %v1195_v53, %v1217_v0  ;;  %v1221_v4 = vsub.f32 %v1198_v55, %v1217_v0 }
0x16ac   :  { %v1222_v12 = vsub.f32 %v1201_v54, %v1217_v0  ;;  %v1223_v18 = vsub.f32 %v1204_v22, %v1217_v0  ;;  %v1224_v25 = vsub.f32 %v1207_v56, %v1217_v0  ;;  %v1225_v31 = vsub.f32 %v1210_v58, %v1217_v0 }
0x16ad   :  { %v1226_v8 = vmul.f32 1.442695, %v1218_v1  ;;  %v1228_v28 = vmul.f32 1.442695, %v1219_v30  ;;  %v1230_v15 = vmul.f32 1.442695, %v1220_v3 }
0x16ae   :  { %v1232_v23 = vmul.f32 1.442695, %v1221_v4  ;;  %v1234_v29 = vmul.f32 1.442695, %v1222_v12  ;;  %v1236_v33 = vmul.f32 1.442695, %v1223_v18 }
0x16af   :  { %3148 = vpow2.f32 %v1226_v8  ;;  %v1238_v34 = vmul.f32 1.442695, %v1224_v25  ;;  %v1240_v36 = vmul.f32 1.442695, %v1225_v31 }
0x16b0   :  { %3150 = vpow2.f32 %v1228_v28 }
0x16b1   :  { %3152 = vpow2.f32 %v1230_v15 }
0x16b2   :  { %3154 = vpow2.f32 %v1232_v23 }
0x16b3   :  { %3156 = vpow2.f32 %v1234_v29 }
0x16b4   :  { %3158 = vpow2.f32 %v1236_v33 }
0x16b5   :  { %3160 = vpow2.f32 %v1238_v34 }
0x16b6   :  { %3162 = vpow2.f32 %v1240_v36 }
0x16b9   :  { %v3149_v26 = vpop.eup %3148 }
0x16ba   :  { %v3151_v37 = vpop.eup %3150 }
0x16bb   :  { %v1242_v38 = vadd.f32 %v3151_v37, %v3149_v26  ;;  %v3153_v24 = vpop.eup %3152 }
0x16bc   :  { %v3155_v41 = vpop.eup %3154 }
0x16bd   :  { %v1243_v40 = vadd.f32 %v3153_v24, %v1242_v38  ;;  %v3157_v44 = vpop.eup %3156 }
0x16be   :  { %v3159_v46 = vpop.eup %3158 }
0x16bf   :  { %v1244_v43 = vadd.f32 %v3155_v41, %v1243_v40  ;;  %v3161_v48 = vpop.eup %3160 }
0x16c0   :  { %v3163_v32 = vpop.eup %3162 }
0x16c1   :  { %v1245_v45 = vadd.f32 %v3157_v44, %v1244_v43 }
0x16c3   :  { %v1246_v47 = vadd.f32 %v3159_v46, %v1245_v45 }
0x16c5   :  { %v1247_v50 = vadd.f32 %v3161_v48, %v1246_v47 }
0x16c7   :  { %v1248_v52 = vadd.f32 %v3163_v32, %v1247_v50 }
0x16c9   :  { %3164 = vrcp.f32 %v1248_v52 }
0x16d3   :  { %v3165_v53 = vpop.eup %3164 }
0x16d4   :  { %v1250_v54 = vmul.f32 %v3165_v53, %v3149_v26  ;;  %v1251_v55 = vmul.f32 %v3165_v53, %v3151_v37  ;;  %v1252_v22 = vmul.f32 %v3165_v53, %v3153_v24  ;;  %v1253_v56 = vmul.f32 %v3165_v53, %v3155_v41 }
0x16d5   :  { %v1254_v57 = vmul.f32 %v3165_v53, %v3157_v44  ;;  %v1255_v63 = vmul.f32 %v3165_v53, %v3159_v46  ;;  %v1256_v4 = vmul.f32 %v3165_v53, %v3161_v48  ;;  %v1257_v15 = vmul.f32 %v3165_v53, %v3163_v32 }
0x16d6   :  { %v1258_v58 = vmul.f32 %v1250_v54, %v3564_v21  ;;  %v1259_v59 = vmul.f32 %v1251_v55, %v3562_v20  ;;  %v1260_v60 = vmul.f32 %v1252_v22, %v3572_v6  ;;  %v1261_v0 = vmul.f32 %v1253_v56, %v3584_v35 }
0x16d7   :  { %v1424_v61 = vpop.f32.mrb[18].mxu0  ;;  %v1262_v8 = vmul.f32 %v1254_v57, %v3570_v27  ;;  %v1263_v18 = vmul.f32 %v1255_v63, %v3592_v39  ;;  %v1264_v29 = vmul.f32 %v1256_v4, %v3582_v11  ;;  %v1265_v34 = vmul.f32 %v1257_v15, %v3597_v42 }
0x16d8   :  { %v2868_v62 = vpop.f32.mrb[19].mxu0  ;;  %v1266_v1 = vsel %vm324_vm3, %v1258_v58, 0.0  ;;  %v1267_v30 = vsel %vm324_vm3, %v1259_v59, 0.0  ;;  %v1269_v28 = vsel %vm324_vm3, %v1260_v60, 0.0  ;;  %v1271_v23 = vsel %vm324_vm3, %v1261_v0, 0.0 }
0x16d9   :  { %v1268_v3 = vadd.f32 %v1267_v30, %v1266_v1  ;;  %v1273_v31 = vsel %vm324_vm3, %v1262_v8, 0.0  ;;  %v1275_v36 = vsel %vm324_vm3, %v1263_v18, 0.0  ;;  %v1277_v37 = vsel %vm324_vm3, %v1264_v29, 0.0 }
0x16da   :  { %v1279_v24 = vsel %vm324_vm3, %v1265_v34, 0.0  ;;  %v297_v41 = vadd.f32 %v3456_v10, %v3461_v14 }
0x16db   :  { %v1270_v12 = vadd.f32 %v1269_v28, %v1268_v3 }
0x16dd   :  { %v1272_v25 = vadd.f32 %v1271_v23, %v1270_v12 }
0x16df   :  { %v1274_v33 = vadd.f32 %v1273_v31, %v1272_v25 }
0x16e1   :  { %v1276_v26 = vadd.f32 %v1275_v36, %v1274_v33 }
0x16e3   :  { %v1278_v38 = vadd.f32 %v1277_v37, %v1276_v26 }
0x16e5   :  { %v1280_v40 = vadd.f32 %v1279_v24, %v1278_v38 }
0x16e7   :  { %2856 = vmatmul.mubr.msk.f32.vlgmr.msra.gmra.mrb[10].mxu1 %vm324_vm3, %v1280_v40  ;;  %1458 = vst.msk [vmem:[#allocation6] sm:$0xff] %vm324_vm3, %v1280_v40 }
0x16e8   :  { %3025 = vmatpush3.bf16.msra.mxu1 %v3611_v49  ;;  %2877 = vmatprep.mubr.msk.f32.mxu1 %vm3261_vm2, %v3262_v16 }
0x16e9   :  { %3026 = vmatprep.subr.bf16.mxu1 %v3260_v7 }
0x16ec   :  { %3028 = vmatpush3.bf16.msra.mxu1 %v3617_v51 }
0x16ed   :  { %3035 = vmatprep.subr.bf16.mxu1 %v3260_v7 }
0x17ba   :  { %v1351_v43 = vpop.f32.mrb[10].mxu1 }
0x17bb   :  { %v1355_v44 = vadd.f32 %v1351_v43, %v297_v41  ;;  %v2857_v45 = vpop.f32.mrb[11].mxu1 }
0x17bd   :  { %v1428_v46 = vadd.f32 %v1424_v61, %v1355_v44 }
0x17bf   :  { %3166 = vtanh.f32 %v1428_v46  ;;  %v2608_v48 = vmul.f32 -1.442695, %v1428_v46 }
0x17c1   :  { %3168 = vpow2.f32 %v2608_v48 }
0x17c9   :  { %v3167_v47 = vpop.eup %3166 }
0x17ca   :  { %1438 = vrot.lane.b32.xlu1 %v3167_v47, %s3263_s4 }
0x17cb   :  { %v3169_v50 = vpop.eup %3168 }
0x17cc   :  { %v1432_v32 = vadd.f32 1.0, %v3169_v50 }
0x17ce   :  { %3170 = vrcp.f32 %v1432_v32 }
0x17d8   :  { %v3171_v52 = vpop.eup %3170 }
0x17d9   :  { %v1436_v10 = vmul.f32 %v3171_v52, %v3537_v2 }
0x183c   :  { %v1439_v53 = vpop.permute.xlu1 %1438 }
0x183d   :  { %v1441_v54 = vmul.f32 %v3171_v52, %v1439_v53 }
0x183f   :  { %1443 = vrot.lane.b32.xlu0 %v1441_v54, %s3264_s16 }
0x18b1   :  { %v1444_v14 = vpop.permute.xlu0 %1443 }
0x18b2   :  { %v3651_v55 = vadd.f32 %v1444_v14, %v1436_v10 }
0x18b4   :  { %3172 = vtanh.f32 %v3651_v55 }
0x18be   :  { %v3173_v22 = vpop.eup %3172 }
0x18bf   :  { %1449 = vrot.lane.b32.xlu1 %v3173_v22, %s3263_s4 }
0x1931   :  { %v1450_v56 = vpop.permute.xlu1 %1449 }
0x1932   :  { %v1452_v57 = vmul.f32 %v3171_v52, %v1450_v56 }
0x1934   :  { %1454 = vrot.lane.b32.xlu1 %v1452_v57, %s3264_s16 }
0x19a6   :  { %v1455_v58 = vpop.permute.xlu1 %1454 }
0x19a7   :  { %1457 = vst.msk [vmem:[#allocation5] sm:$0xff] %vm324_vm3, %v1455_v58  ;;  %2889 = vmatmul.mubr.msk.f32.vlgmr.msra.gmra.mrb[20].mxu0 %vm324_vm3, %v1455_v58  ;;  %v1468_v59 = vmul.f32 %v1455_v58, %v3562_v20  ;;  %v1467_v2 = vmul.f32 %v1455_v58, %v3564_v21  ;;  %v1471_v62 = vmul.f32 %v1455_v58, %v3570_v27 }
0x19a8   :  { %3043 = vmatpush3.bf16.msra.mxu0 %v3549_v5  ;;  %v1469_v63 = vmul.f32 %v1455_v58, %v3572_v6  ;;  %2910 = vmatprep.mubr.msk.f32.mxu0 %vm3261_vm2, %v3262_v16  ;;  %v1473_v30 = vmul.f32 %v1455_v58, %v3582_v11  ;;  %v1470_v3 = vmul.f32 %v1455_v58, %v3584_v35 }
0x19a9   :  { %v1478_v60 = vsel %vm324_vm3, %v1468_v59, 0.0  ;;  %v1475_v61 = vsel %vm324_vm3, %v1467_v2, 0.0  ;;  %3044 = vmatprep.subr.bf16.mxu0 %v3260_v7  ;;  %v1487_v0 = vsel %vm324_vm3, %v1471_v62, 0.0  ;;  %v1472_v28 = vmul.f32 %v1455_v58, %v3592_v39 }
0x19aa   :  { %1479 = vadd.xlane.f32.xlu1 %v1478_v60  ;;  %1476 = vadd.xlane.f32.xlu0 %v1475_v61  ;;  %v1481_v1 = vsel %vm324_vm3, %v1469_v63, 0.0  ;;  %v1493_v4 = vsel %vm324_vm3, %v1473_v30, 0.0  ;;  %v1484_v8 = vsel %vm324_vm3, %v1470_v3, 0.0  ;;  %v1474_v15 = vmul.f32 %v1455_v58, %v3597_v42 }
0x19ab   :  { %v1490_v12 = vsel %vm324_vm3, %v1472_v28, 0.0 }
0x19ac   :  { %3046 = vmatpush3.bf16.msra.mxu0 %v3555_v9  ;;  %v1496_v18 = vsel %vm324_vm3, %v1474_v15, 0.0 }
0x19ad   :  { %3053 = vmatprep.subr.bf16.mxu0 %v3260_v7 }
0x19ae   :  { %1488 = vadd.xlane.f32.xlu1 %v1487_v0  ;;  %1482 = vadd.xlane.f32.xlu0 %v1481_v1 }
0x19b2   :  { %1494 = vadd.xlane.f32.xlu1 %v1493_v4  ;;  %1485 = vadd.xlane.f32.xlu0 %v1484_v8 }
0x19b6   :  { %1491 = vadd.xlane.f32.xlu0 %v1490_v12 }
0x19ba   :  { %1497 = vadd.xlane.f32.xlu0 %v1496_v18 }
0x1a37   :  { %v1477_v23 = vpop.xlane.xlu0 %1476  ;;  %v1480_v25 = vpop.xlane.xlu1 %1479 }
0x1a3b   :  { %v1483_v29 = vpop.xlane.xlu0 %1482  ;;  %v1489_v31 = vpop.xlane.xlu1 %1488 }
0x1a3c   :  { %v1499_v38 = vmax.f32 %v1477_v23, %v1489_v31 }
0x1a3f   :  { %v1486_v33 = vpop.xlane.xlu0 %1485  ;;  %v1495_v36 = vpop.xlane.xlu1 %1494 }
0x1a40   :  { %v1501_v24 = vmax.f32 %v1483_v29, %v1495_v36 }
0x1a43   :  { %v1492_v34 = vpop.xlane.xlu0 %1491 }
0x1a44   :  { %v1500_v26 = vmax.f32 %v1480_v25, %v1492_v34 }
0x1a46   :  { %v1503_v41 = vmax.f32 %v1499_v38, %v1500_v26 }
0x1a47   :  { %v1498_v37 = vpop.xlane.xlu0 %1497 }
0x1a48   :  { %v1502_v40 = vmax.f32 %v1486_v33, %v1498_v37 }
0x1a4a   :  { %v1504_v43 = vmax.f32 %v1501_v24, %v1502_v40 }
0x1a4c   :  { %v1505_v44 = vmax.f32 %v1503_v41, %v1504_v43 }
0x1a4e   :  { %v1506_v45 = vsub.f32 %v1477_v23, %v1505_v44  ;;  %v1507_v46 = vsub.f32 %v1480_v25, %v1505_v44  ;;  %v1508_v47 = vsub.f32 %v1483_v29, %v1505_v44  ;;  %v1509_v48 = vsub.f32 %v1486_v33, %v1505_v44 }
0x1a4f   :  { %v1510_v52 = vsub.f32 %v1489_v31, %v1505_v44  ;;  %v1511_v54 = vsub.f32 %v1492_v34, %v1505_v44  ;;  %v1512_v14 = vsub.f32 %v1495_v36, %v1505_v44  ;;  %v1513_v56 = vsub.f32 %v1498_v37, %v1505_v44 }
0x1a50   :  { %v1514_v50 = vmul.f32 1.442695, %v1506_v45  ;;  %v1516_v32 = vmul.f32 1.442695, %v1507_v46  ;;  %v1518_v53 = vmul.f32 1.442695, %v1508_v47 }
0x1a51   :  { %v1520_v10 = vmul.f32 1.442695, %v1509_v48  ;;  %v1522_v22 = vmul.f32 1.442695, %v1510_v52  ;;  %v1524_v57 = vmul.f32 1.442695, %v1511_v54 }
0x1a52   :  { %3174 = vpow2.f32 %v1514_v50  ;;  %v1526_v58 = vmul.f32 1.442695, %v1512_v14  ;;  %v1528_v59 = vmul.f32 1.442695, %v1513_v56 }
0x1a53   :  { %3176 = vpow2.f32 %v1516_v32 }
0x1a54   :  { %3178 = vpow2.f32 %v1518_v53 }
0x1a55   :  { %3180 = vpow2.f32 %v1520_v10 }
0x1a56   :  { %3182 = vpow2.f32 %v1522_v22 }
0x1a57   :  { %3184 = vpow2.f32 %v1524_v57 }
0x1a58   :  { %3186 = vpow2.f32 %v1526_v58 }
0x1a59   :  { %3188 = vpow2.f32 %v1528_v59 }
0x1a5c   :  { %v3175_v2 = vpop.eup %3174 }
0x1a5d   :  { %v3177_v60 = vpop.eup %3176 }
0x1a5e   :  { %v1530_v61 = vadd.f32 %v3177_v60, %v3175_v2  ;;  %v3179_v62 = vpop.eup %3178 }
0x1a5f   :  { %v3181_v0 = vpop.eup %3180 }
0x1a60   :  { %v1531_v63 = vadd.f32 %v3179_v62, %v1530_v61  ;;  %v3183_v30 = vpop.eup %3182 }
0x1a61   :  { %v3185_v4 = vpop.eup %3184 }
0x1a62   :  { %v1532_v1 = vadd.f32 %v3181_v0, %v1531_v63  ;;  %v3187_v28 = vpop.eup %3186 }
0x1a63   :  { %v3189_v15 = vpop.eup %3188 }
0x1a64   :  { %v1533_v3 = vadd.f32 %v3183_v30, %v1532_v1 }
0x1a66   :  { %v1534_v8 = vadd.f32 %v3185_v4, %v1533_v3 }
0x1a68   :  { %v1535_v12 = vadd.f32 %v3187_v28, %v1534_v8 }
0x1a6a   :  { %v1536_v18 = vadd.f32 %v3189_v15, %v1535_v12 }
0x1a6c   :  { %3190 = vrcp.f32 %v1536_v18 }
0x1a76   :  { %v3191_v23 = vpop.eup %3190 }
0x1a77   :  { %v1538_v25 = vmul.f32 %v3191_v23, %v3175_v2  ;;  %v1539_v29 = vmul.f32 %v3191_v23, %v3177_v60  ;;  %v1540_v31 = vmul.f32 %v3191_v23, %v3179_v62  ;;  %v1541_v33 = vmul.f32 %v3191_v23, %v3181_v0 }
0x1a78   :  { %v1542_v34 = vmul.f32 %v3191_v23, %v3183_v30  ;;  %v1543_v40 = vmul.f32 %v3191_v23, %v3185_v4  ;;  %v1544_v46 = vmul.f32 %v3191_v23, %v3187_v28  ;;  %v1545_v32 = vmul.f32 %v3191_v23, %v3189_v15 }
0x1a79   :  { %v1546_v36 = vmul.f32 %v1538_v25, %v3564_v21  ;;  %v1547_v26 = vmul.f32 %v1539_v29, %v3562_v20  ;;  %v1548_v37 = vmul.f32 %v1540_v31, %v3572_v6  ;;  %v1549_v41 = vmul.f32 %v1541_v33, %v3584_v35 }
0x1a7a   :  { %v1713_v38 = vpop.f32.mrb[20].mxu0  ;;  %v1550_v47 = vmul.f32 %v1542_v34, %v3570_v27  ;;  %v1551_v52 = vmul.f32 %v1543_v40, %v3592_v39  ;;  %v1552_v10 = vmul.f32 %v1544_v46, %v3582_v11  ;;  %v1553_v56 = vmul.f32 %v1545_v32, %v3597_v42 }
0x1a7b   :  { %v2890_v24 = vpop.f32.mrb[21].mxu0  ;;  %v1554_v43 = vsel %vm324_vm3, %v1546_v36, 0.0  ;;  %v1555_v44 = vsel %vm324_vm3, %v1547_v26, 0.0  ;;  %v1557_v48 = vsel %vm324_vm3, %v1548_v37, 0.0  ;;  %v1559_v53 = vsel %vm324_vm3, %v1549_v41, 0.0 }
0x1a7c   :  { %v1556_v45 = vadd.f32 %v1555_v44, %v1554_v43  ;;  %v1561_v14 = vsel %vm324_vm3, %v1550_v47, 0.0  ;;  %v1563_v57 = vsel %vm324_vm3, %v1551_v52, 0.0  ;;  %v1565_v59 = vsel %vm324_vm3, %v1552_v10, 0.0 }
0x1a7d   :  { %v1567_v60 = vsel %vm324_vm3, %v1553_v56, 0.0 }
0x1a7e   :  { %v1558_v50 = vadd.f32 %v1557_v48, %v1556_v45 }
0x1a80   :  { %v1560_v54 = vadd.f32 %v1559_v53, %v1558_v50 }
0x1a82   :  { %v1562_v22 = vadd.f32 %v1561_v14, %v1560_v54 }
0x1a84   :  { %v1564_v58 = vadd.f32 %v1563_v57, %v1562_v22 }
0x1a86   :  { %v1566_v2 = vadd.f32 %v1565_v59, %v1564_v58 }
0x1a88   :  { %v1568_v61 = vadd.f32 %v1567_v60, %v1566_v2 }
0x1a8a   :  { %2878 = vmatmul.mubr.msk.f32.vlgmr.msra.gmra.mrb[12].mxu1 %vm324_vm3, %v1568_v61  ;;  %1749 = vst.msk [vmem:[#allocation6 + $0x8] sm:$0xff] %vm324_vm3, %v1568_v61 }
0x1a8b   :  { %3037 = vmatpush3.bf16.msra.mxu1 %v3611_v49  ;;  %2899 = vmatprep.mubr.msk.f32.mxu1 %vm3261_vm2, %v3262_v16 }
0x1a8c   :  { %3038 = vmatprep.subr.bf16.mxu1 %v3260_v7 }
0x1a8f   :  { %3040 = vmatpush3.bf16.msra.mxu1 %v3617_v51 }
0x1a90   :  { %3047 = vmatprep.subr.bf16.mxu1 %v3260_v7 }
0x1b5d   :  { %v1640_v62 = vpop.f32.mrb[12].mxu1 }
0x1b5e   :  { %v1644_v63 = vadd.f32 %v1640_v62, %v3459_v13  ;;  %v2879_v0 = vpop.f32.mrb[13].mxu1 }
0x1b60   :  { %v1717_v1 = vadd.f32 %v1713_v38, %v1644_v63 }
0x1b62   :  { %3192 = vtanh.f32 %v1717_v1  ;;  %v2611_v3 = vmul.f32 -1.442695, %v1717_v1 }
0x1b64   :  { %3194 = vpow2.f32 %v2611_v3 }
0x1b6c   :  { %v3193_v30 = vpop.eup %3192 }
0x1b6d   :  { %1727 = vrot.lane.b32.xlu1 %v3193_v30, %s3263_s4 }
0x1b6e   :  { %v3195_v4 = vpop.eup %3194 }
0x1b6f   :  { %v1721_v8 = vadd.f32 1.0, %v3195_v4 }
0x1b71   :  { %3196 = vrcp.f32 %v1721_v8 }
0x1b7b   :  { %v3197_v28 = vpop.eup %3196 }
0x1b7c   :  { %v1725_v18 = vmul.f32 %v3197_v28, %v3651_v55 }
0x1bdf   :  { %v1728_v12 = vpop.permute.xlu1 %1727 }
0x1be0   :  { %v1730_v15 = vmul.f32 %v3197_v28, %v1728_v12 }
0x1be2   :  { %1732 = vrot.lane.b32.xlu0 %v1730_v15, %s3264_s16 }
0x1c54   :  { %v1733_v23 = vpop.permute.xlu0 %1732 }
0x1c55   :  { %v3708_v13 = vadd.f32 %v1733_v23, %v1725_v18 }
0x1c57   :  { %3198 = vtanh.f32 %v3708_v13 }
0x1c61   :  { %v3199_v25 = vpop.eup %3198 }
0x1c62   :  { %1738 = vrot.lane.b32.xlu1 %v3199_v25, %s3263_s4 }
0x1cd4   :  { %v1739_v29 = vpop.permute.xlu1 %1738 }
0x1cd5   :  { %v1741_v31 = vmul.f32 %v3197_v28, %v1739_v29 }
0x1cd7   :  { %1743 = vrot.lane.b32.xlu1 %v1741_v31, %s3264_s16 }
0x1d49   :  { %v1744_v33 = vpop.permute.xlu1 %1743 }
0x1d4a   :  { %1747 = vst.msk [vmem:[#allocation5 + $0x8] sm:$0xff] %vm324_vm3, %v1744_v33  ;;  %2911 = vmatmul.mubr.msk.f32.vlgmr.msra.gmra.mrb[22].mxu0 %vm324_vm3, %v1744_v33  ;;  %v1759_v34 = vmul.f32 %v1744_v33, %v3562_v20  ;;  %v1758_v55 = vmul.f32 %v1744_v33, %v3564_v21  ;;  %v1762_v37 = vmul.f32 %v1744_v33, %v3570_v27 }
0x1d4b   :  { %3055 = vmatpush3.bf16.msra.mxu0 %v3549_v5  ;;  %v1760_v38 = vmul.f32 %v1744_v33, %v3572_v6  ;;  %2932 = vmatprep.mubr.msk.f32.mxu0 %vm3261_vm2, %v3262_v16  ;;  %v1764_v40 = vmul.f32 %v1744_v33, %v3582_v11  ;;  %v1761_v41 = vmul.f32 %v1744_v33, %v3584_v35 }
0x1d4c   :  { %v1769_v36 = vsel %vm324_vm3, %v1759_v34, 0.0  ;;  %v1766_v26 = vsel %vm324_vm3, %v1758_v55, 0.0  ;;  %3056 = vmatprep.subr.bf16.mxu0 %v3260_v7  ;;  %v1778_v24 = vsel %vm324_vm3, %v1762_v37, 0.0  ;;  %v1763_v45 = vmul.f32 %v1744_v33, %v3592_v39 }
0x1d4d   :  { %1770 = vadd.xlane.f32.xlu1 %v1769_v36  ;;  %1767 = vadd.xlane.f32.xlu0 %v1766_v26  ;;  %v1772_v5 = vsel %vm324_vm3, %v1760_v38, 0.0  ;;  %v1784_v43 = vsel %vm324_vm3, %v1764_v40, 0.0  ;;  %v1775_v44 = vsel %vm324_vm3, %v1761_v41, 0.0  ;;  %v1765_v46 = vmul.f32 %v1744_v33, %v3597_v42 }
0x1d4f   :  { %3058 = vmatpush3.bf16.msra.mxu0 %v3555_v9  ;;  %v1781_v9 = vsel %vm324_vm3, %v1763_v45, 0.0  ;;  %v1787_v47 = vsel %vm324_vm3, %v1765_v46, 0.0 }
0x1d51   :  { %1779 = vadd.xlane.f32.xlu1 %v1778_v24  ;;  %1773 = vadd.xlane.f32.xlu0 %v1772_v5 }
0x1d55   :  { %1785 = vadd.xlane.f32.xlu1 %v1784_v43  ;;  %1776 = vadd.xlane.f32.xlu0 %v1775_v44 }
0x1d59   :  { %1782 = vadd.xlane.f32.xlu0 %v1781_v9 }
0x1d5d   :  { %1788 = vadd.xlane.f32.xlu0 %v1787_v47 }
0x1dda   :  { %v1768_v48 = vpop.xlane.xlu0 %1767  ;;  %v1771_v50 = vpop.xlane.xlu1 %1770 }
0x1dde   :  { %v1774_v32 = vpop.xlane.xlu0 %1773  ;;  %v1780_v52 = vpop.xlane.xlu1 %1779 }
0x1ddf   :  { %v1790_v56 = vmax.f32 %v1768_v48, %v1780_v52 }
0x1de2   :  { %v1777_v53 = vpop.xlane.xlu0 %1776  ;;  %v1786_v10 = vpop.xlane.xlu1 %1785 }
0x1de3   :  { %v1792_v57 = vmax.f32 %v1774_v32, %v1786_v10 }
0x1de6   :  { %v1783_v54 = vpop.xlane.xlu0 %1782 }
0x1de7   :  { %v1791_v14 = vmax.f32 %v1771_v50, %v1783_v54 }
0x1de9   :  { %v1794_v59 = vmax.f32 %v1790_v56, %v1791_v14 }
0x1dea   :  { %v1789_v22 = vpop.xlane.xlu0 %1788 }
0x1deb   :  { %v1793_v58 = vmax.f32 %v1777_v53, %v1789_v22 }
0x1ded   :  { %v1795_v2 = vmax.f32 %v1792_v57, %v1793_v58 }
0x1def   :  { %v1796_v60 = vmax.f32 %v1794_v59, %v1795_v2 }
0x1df1   :  { %v1797_v61 = vsub.f32 %v1768_v48, %v1796_v60  ;;  %v1798_v62 = vsub.f32 %v1771_v50, %v1796_v60  ;;  %v1799_v63 = vsub.f32 %v1774_v32, %v1796_v60  ;;  %v1800_v0 = vsub.f32 %v1777_v53, %v1796_v60 }
0x1df2   :  { %v1801_v3 = vsub.f32 %v1780_v52, %v1796_v60  ;;  %v1802_v8 = vsub.f32 %v1783_v54, %v1796_v60  ;;  %v1803_v12 = vsub.f32 %v1786_v10, %v1796_v60  ;;  %v1804_v18 = vsub.f32 %v1789_v22, %v1796_v60 }
0x1df3   :  { %v1805_v1 = vmul.f32 1.442695, %v1797_v61  ;;  %v1807_v30 = vmul.f32 1.442695, %v1798_v62  ;;  %v1809_v4 = vmul.f32 1.442695, %v1799_v63 }
0x1df4   :  { %v1811_v28 = vmul.f32 1.442695, %v1800_v0  ;;  %v1813_v15 = vmul.f32 1.442695, %v1801_v3  ;;  %v1815_v23 = vmul.f32 1.442695, %v1802_v8 }
0x1df5   :  { %3200 = vpow2.f32 %v1805_v1  ;;  %v1817_v25 = vmul.f32 1.442695, %v1803_v12  ;;  %v1819_v29 = vmul.f32 1.442695, %v1804_v18 }
0x1df6   :  { %3202 = vpow2.f32 %v1807_v30 }
0x1df7   :  { %3204 = vpow2.f32 %v1809_v4 }
0x1df8   :  { %3206 = vpow2.f32 %v1811_v28 }
0x1df9   :  { %3208 = vpow2.f32 %v1813_v15 }
0x1dfa   :  { %3210 = vpow2.f32 %v1815_v23 }
0x1dfb   :  { %3212 = vpow2.f32 %v1817_v25 }
0x1dfc   :  { %3214 = vpow2.f32 %v1819_v29 }
0x1dff   :  { %v3201_v31 = vpop.eup %3200 }
0x1e00   :  { %v3203_v33 = vpop.eup %3202 }
0x1e01   :  { %v1821_v34 = vadd.f32 %v3203_v33, %v3201_v31  ;;  %v3205_v55 = vpop.eup %3204 }
0x1e02   :  { %v3207_v26 = vpop.eup %3206 }
0x1e03   :  { %v1822_v36 = vadd.f32 %v3205_v55, %v1821_v34  ;;  %v3209_v38 = vpop.eup %3208 }
0x1e04   :  { %v3211_v5 = vpop.eup %3210 }
0x1e05   :  { %v1823_v37 = vadd.f32 %v3207_v26, %v1822_v36  ;;  %v3213_v41 = vpop.eup %3212 }
0x1e06   :  { %v3215_v44 = vpop.eup %3214 }
0x1e07   :  { %v1824_v24 = vadd.f32 %v3209_v38, %v1823_v37 }
0x1e09   :  { %v1825_v40 = vadd.f32 %v3211_v5, %v1824_v24 }
0x1e0b   :  { %v1826_v43 = vadd.f32 %v3213_v41, %v1825_v40 }
0x1e0d   :  { %v1827_v45 = vadd.f32 %v3215_v44, %v1826_v43 }
0x1e0f   :  { %3216 = vrcp.f32 %v1827_v45 }
0x1e19   :  { %v3217_v9 = vpop.eup %3216 }
0x1e1a   :  { %v1829_v46 = vmul.f32 %v3217_v9, %v3201_v31  ;;  %v1830_v47 = vmul.f32 %v3217_v9, %v3203_v33  ;;  %v1831_v48 = vmul.f32 %v3217_v9, %v3205_v55  ;;  %v1832_v50 = vmul.f32 %v3217_v9, %v3207_v26 }
0x1e1b   :  { %v1833_v32 = vmul.f32 %v3217_v9, %v3209_v38  ;;  %v1834_v22 = vmul.f32 %v3217_v9, %v3211_v5  ;;  %v1835_v2 = vmul.f32 %v3217_v9, %v3213_v41  ;;  %v1836_v63 = vmul.f32 %v3217_v9, %v3215_v44 }
0x1e1c   :  { %v1837_v52 = vmul.f32 %v1829_v46, %v3564_v21  ;;  %v1838_v53 = vmul.f32 %v1830_v47, %v3562_v20  ;;  %v1839_v54 = vmul.f32 %v1831_v48, %v3572_v6  ;;  %v1840_v56 = vmul.f32 %v1832_v50, %v3584_v35 }
0x1e1d   :  { %v2004_v10 = vpop.f32.mrb[22].mxu0  ;;  %v1841_v60 = vmul.f32 %v1833_v32, %v3570_v27  ;;  %v1842_v0 = vmul.f32 %v1834_v22, %v3592_v39  ;;  %v1843_v3 = vmul.f32 %v1835_v2, %v3582_v11  ;;  %v1844_v28 = vmul.f32 %v1836_v63, %v3597_v42 }
0x1e1e   :  { %v2912_v14 = vpop.f32.mrb[23].mxu0  ;;  %v1845_v57 = vsel %vm324_vm3, %v1837_v52, 0.0  ;;  %v1846_v58 = vsel %vm324_vm3, %v1838_v53, 0.0  ;;  %v1848_v61 = vsel %vm324_vm3, %v1839_v54, 0.0  ;;  %v1850_v1 = vsel %vm324_vm3, %v1840_v56, 0.0 }
0x1e1f   :  { %v1847_v59 = vadd.f32 %v1846_v58, %v1845_v57  ;;  %v1852_v4 = vsel %vm324_vm3, %v1841_v60, 0.0  ;;  %v1854_v12 = vsel %vm324_vm3, %v1842_v0, 0.0  ;;  %v1856_v18 = vsel %vm324_vm3, %v1843_v3, 0.0 }
0x1e20   :  { %v1858_v25 = vsel %vm324_vm3, %v1844_v28, 0.0 }
0x1e21   :  { %v1849_v62 = vadd.f32 %v1848_v61, %v1847_v59 }
0x1e23   :  { %v1851_v30 = vadd.f32 %v1850_v1, %v1849_v62 }
0x1e25   :  { %v1853_v8 = vadd.f32 %v1852_v4, %v1851_v30 }
0x1e27   :  { %v1855_v15 = vadd.f32 %v1854_v12, %v1853_v8 }
0x1e29   :  { %v1857_v23 = vadd.f32 %v1856_v18, %v1855_v15 }
0x1e2b   :  { %v1859_v29 = vadd.f32 %v1858_v25, %v1857_v23 }
0x1e2d   :  { %2900 = vmatmul.mubr.msk.f32.vlgmr.msra.gmra.mrb[14].mxu1 %vm324_vm3, %v1859_v29  ;;  %2040 = vst.msk [vmem:[#allocation6 + $0x10] sm:$0xff] %vm324_vm3, %v1859_v29 }
0x1e2e   :  { %3049 = vmatpush3.bf16.msra.mxu1 %v3611_v49  ;;  %2921 = vmatprep.mubr.msk.f32.mxu1 %vm3261_vm2, %v3262_v16 }
0x1e2f   :  { %3050 = vmatprep.subr.bf16.mxu1 %v3260_v7 }
0x1e32   :  { %3052 = vmatpush3.bf16.msra.mxu1 %v3617_v51 }
0x1f00   :  { %v1931_v31 = vpop.f32.mrb[14].mxu1 }
0x1f01   :  { %v1935_v33 = vadd.f32 %v1931_v31, %v3467_v19  ;;  %v2901_v34 = vpop.f32.mrb[15].mxu1 }
0x1f03   :  { %v2008_v55 = vadd.f32 %v2004_v10, %v1935_v33 }
0x1f05   :  { %3218 = vtanh.f32 %v2008_v55  ;;  %v2614_v26 = vmul.f32 -1.442695, %v2008_v55 }
0x1f07   :  { %3220 = vpow2.f32 %v2614_v26 }
0x1f0f   :  { %v3219_v36 = vpop.eup %3218 }
0x1f10   :  { %2018 = vrot.lane.b32.xlu1 %v3219_v36, %s3263_s4 }
0x1f11   :  { %v3221_v37 = vpop.eup %3220 }
0x1f12   :  { %v2012_v49 = vadd.f32 1.0, %v3221_v37 }
0x1f14   :  { %3222 = vrcp.f32 %v2012_v49 }
0x1f1e   :  { %v3223_v38 = vpop.eup %3222 }
0x1f1f   :  { %v2016_v7 = vmul.f32 %v3223_v38, %v3708_v13 }
0x1f82   :  { %v2019_v16 = vpop.permute.xlu1 %2018 }
0x1f83   :  { %v2021_v24 = vmul.f32 %v3223_v38, %v2019_v16 }
0x1f85   :  { %2023 = vrot.lane.b32.xlu0 %v2021_v24, %s3264_s16 }
0x1ff7   :  { %v2024_v51 = vpop.permute.xlu0 %2023 }
0x1ff8   :  { %v3763_v19 = vadd.f32 %v2024_v51, %v2016_v7 }
0x1ffa   :  { %3224 = vtanh.f32 %v3763_v19 }
0x2004   :  { %v3225_v5 = vpop.eup %3224 }
0x2005   :  { %2029 = vrot.lane.b32.xlu1 %v3225_v5, %s3263_s4 }
0x2077   :  { %v2030_v40 = vpop.permute.xlu1 %2029 }
0x2078   :  { %v2032_v41 = vmul.f32 %v3223_v38, %v2030_v40 }
0x207a   :  { %2034 = vrot.lane.b32.xlu1 %v2032_v41, %s3264_s16 }
0x20ec   :  { %v2035_v43 = vpop.permute.xlu1 %2034 }
0x20ed   :  { %2038 = vst.msk [vmem:[#allocation5 + $0x10] sm:$0xff] %vm324_vm3, %v2035_v43  ;;  %2933 = vmatmul.mubr.msk.f32.vlgmr.msra.gmra.mrb[24].mxu0 %vm324_vm3, %v2035_v43  ;;  %v2050_v44 = vmul.f32 %v2035_v43, %v3562_v20  ;;  %v2049_v13 = vmul.f32 %v2035_v43, %v3564_v21  ;;  %v2053_v46 = vmul.f32 %v2035_v43, %v3570_v27 }
0x20ee   :  { %v2051_v47 = vmul.f32 %v2035_v43, %v3572_v6  ;;  %v2055_v32 = vmul.f32 %v2035_v43, %v3582_v11  ;;  %v2052_v20 = vmul.f32 %v2035_v43, %v3584_v35  ;;  %v2054_v27 = vmul.f32 %v2035_v43, %v3592_v39  ;;  %v2353_v11 = vld [vmem:[%s3902_s10] sm:$0xff]  ;;  %v2354_v35 = vld [vmem:[%s3902_s10 + $0x8] sm:$0xff] }
0x20ef   :  { %v2060_v45 = vsel %vm324_vm3, %v2050_v44, 0.0  ;;  %v2057_v9 = vsel %vm324_vm3, %v2049_v13, 0.0  ;;  %v2069_v48 = vsel %vm324_vm3, %v2053_v46, 0.0  ;;  %v2056_v53 = vmul.f32 %v2035_v43, %v3597_v42 }
0x20f0   :  { %2061 = vadd.xlane.f32.xlu1 %v2060_v45  ;;  %2058 = vadd.xlane.f32.xlu0 %v2057_v9  ;;  %v2063_v50 = vsel %vm324_vm3, %v2051_v47, 0.0  ;;  %v2075_v21 = vsel %vm324_vm3, %v2055_v32, 0.0  ;;  %v2066_v52 = vsel %vm324_vm3, %v2052_v20, 0.0  ;;  %v2072_v6 = vsel %vm324_vm3, %v2054_v27, 0.0  ;;  %v3252_v27 = vld [vmem:[#allocation4] sm:$0xff] }
0x20f1   :  { %v2078_v54 = vsel %vm324_vm3, %v2056_v53, 0.0  ;;  %v3792_v10 = vpack.c.bf16 %v2354_v35, %v2353_v11  ;;  %v3253_v53 = vld [vmem:[#allocation4 + $0x8] sm:$0xff]  ;;  %v3254_v11 = vld [vmem:[#allocation4 + $0x10] sm:$0xff] }
0x20f3   :  { %3060 = vmatprep.subr.bf16.mxu1 %v3792_v10 }
0x20f4   :  { %2070 = vadd.xlane.f32.xlu1 %v2069_v48  ;;  %2064 = vadd.xlane.f32.xlu0 %v2063_v50 }
0x20f8   :  { %2076 = vadd.xlane.f32.xlu1 %v2075_v21  ;;  %2067 = vadd.xlane.f32.xlu0 %v2066_v52 }
0x20fc   :  { %2073 = vadd.xlane.f32.xlu0 %v2072_v6 }
0x2100   :  { %2079 = vadd.xlane.f32.xlu0 %v2078_v54 }
0x217d   :  { %v2059_v39 = vpop.xlane.xlu0 %2058  ;;  %v2062_v14 = vpop.xlane.xlu1 %2061 }
0x2181   :  { %v2065_v22 = vpop.xlane.xlu0 %2064  ;;  %v2071_v42 = vpop.xlane.xlu1 %2070 }
0x2182   :  { %v2081_v60 = vmax.f32 %v2059_v39, %v2071_v42 }
0x2185   :  { %v2068_v56 = vpop.xlane.xlu0 %2067  ;;  %v2077_v58 = vpop.xlane.xlu1 %2076 }
0x2186   :  { %v2083_v61 = vmax.f32 %v2065_v22, %v2077_v58 }
0x2189   :  { %v2074_v57 = vpop.xlane.xlu0 %2073 }
0x218a   :  { %v2082_v59 = vmax.f32 %v2062_v14, %v2074_v57 }
0x218c   :  { %v2085_v63 = vmax.f32 %v2081_v60, %v2082_v59  ;;  %v3256_v59 = vld [vmem:[#allocation4 + $0x20] sm:$0xff] }
0x218d   :  { %v2080_v2 = vpop.xlane.xlu0 %2079 }
0x218e   :  { %v2084_v62 = vmax.f32 %v2068_v56, %v2080_v2 }
0x2190   :  { %v2086_v0 = vmax.f32 %v2083_v61, %v2084_v62  ;;  %v3257_v62 = vld [vmem:[#allocation4 + $0x28] sm:$0xff] }
0x2192   :  { %v2087_v1 = vmax.f32 %v2085_v63, %v2086_v0 }
0x2194   :  { %v2088_v30 = vsub.f32 %v2059_v39, %v2087_v1  ;;  %v2089_v3 = vsub.f32 %v2062_v14, %v2087_v1  ;;  %v2090_v4 = vsub.f32 %v2065_v22, %v2087_v1  ;;  %v2091_v8 = vsub.f32 %v2068_v56, %v2087_v1  ;;  %v3255_v22 = vld [vmem:[#allocation4 + $0x18] sm:$0xff] }
0x2195   :  { %v2092_v15 = vsub.f32 %v2071_v42, %v2087_v1  ;;  %v2093_v23 = vsub.f32 %v2074_v57, %v2087_v1  ;;  %v2094_v29 = vsub.f32 %v2077_v58, %v2087_v1  ;;  %v2095_v33 = vsub.f32 %v2080_v2, %v2087_v1 }
0x2196   :  { %v2096_v28 = vmul.f32 1.442695, %v2088_v30  ;;  %v2098_v12 = vmul.f32 1.442695, %v2089_v3  ;;  %v2100_v18 = vmul.f32 1.442695, %v2090_v4 }
0x2197   :  { %v2102_v25 = vmul.f32 1.442695, %v2091_v8  ;;  %v2104_v31 = vmul.f32 1.442695, %v2092_v15  ;;  %v2106_v34 = vmul.f32 1.442695, %v2093_v23 }
0x2198   :  { %3226 = vpow2.f32 %v2096_v28  ;;  %v2108_v55 = vmul.f32 1.442695, %v2094_v29  ;;  %v2110_v36 = vmul.f32 1.442695, %v2095_v33  ;;  %v3258_v30 = vld [vmem:[#allocation4 + $0x30] sm:$0xff]  ;;  %v3259_v28 = vld [vmem:[#allocation4 + $0x38] sm:$0xff] }
0x2199   :  { %3228 = vpow2.f32 %v2098_v12  ;;  %v2356_v29 = vld [vmem:[%s3902_s10 + $0x18] sm:$0xff] }
0x219a   :  { %3230 = vpow2.f32 %v2100_v18 }
0x219b   :  { %3232 = vpow2.f32 %v2102_v25  ;;  %v2355_v25 = vld [vmem:[%s3902_s10 + $0x10] sm:$0xff] }
0x219c   :  { %3234 = vpow2.f32 %v2104_v31 }
0x219d   :  { %3236 = vpow2.f32 %v2106_v34 }
0x219e   :  { %3238 = vpow2.f32 %v2108_v55  ;;  %v3063_v55 = vpack.c.bf16 %v2356_v29, %v2355_v25 }
0x219f   :  { %3240 = vpow2.f32 %v2110_v36  ;;  %v2345_v36 = vld [vmem:[%s3904_s9] sm:$0xff] }
0x21a2   :  { %v3227_v26 = vpop.eup %3226 }
0x21a3   :  { %v3229_v37 = vpop.eup %3228 }
0x21a4   :  { %v2112_v49 = vadd.f32 %v3229_v37, %v3227_v26  ;;  %v3231_v38 = vpop.eup %3230 }
0x21a5   :  { %v3233_v24 = vpop.eup %3232 }
0x21a6   :  { %v2113_v16 = vadd.f32 %v3231_v38, %v2112_v49  ;;  %v3235_v51 = vpop.eup %3234 }
0x21a7   :  { %v3237_v40 = vpop.eup %3236 }
0x21a8   :  { %v2114_v7 = vadd.f32 %v3233_v24, %v2113_v16  ;;  %v3239_v43 = vpop.eup %3238  ;;  %v2348_v16 = vld [vmem:[%s3904_s9 + $0x18] sm:$0xff] }
0x21a9   :  { %v3241_v13 = vpop.eup %3240 }
0x21aa   :  { %v2115_v5 = vadd.f32 %v3235_v51, %v2114_v7  ;;  %v2350_v7 = vld [vmem:[#allocation6 + $0x8] sm:$0xff] }
0x21ac   :  { %v2116_v41 = vadd.f32 %v3237_v40, %v2115_v5  ;;  %v2341_v5 = vld [vmem:[#allocation5] sm:$0xff] }
0x21ae   :  { %v2117_v44 = vadd.f32 %v3239_v43, %v2116_v41  ;;  %v2343_v41 = vld [vmem:[#allocation5 + $0x10] sm:$0xff] }
0x21b0   :  { %v2118_v45 = vadd.f32 %v3241_v13, %v2117_v44 }
0x21b2   :  { %3242 = vrcp.f32 %v2118_v45 }
0x21bc   :  { %v3243_v9 = vpop.eup %3242 }
0x21bd   :  { %v2127_v46 = vmul.f32 %v3243_v9, %v3241_v13  ;;  %v2120_v47 = vmul.f32 %v3243_v9, %v3227_v26  ;;  %v2121_v48 = vmul.f32 %v3243_v9, %v3229_v37  ;;  %v2122_v50 = vmul.f32 %v3243_v9, %v3231_v38  ;;  %v2346_v26 = vld [vmem:[%s3904_s9 + $0x8] sm:$0xff]  ;;  %v2349_v37 = vld [vmem:[#allocation6] sm:$0xff]  ;;  %v2347_v38 = vld [vmem:[%s3904_s9 + $0x10] sm:$0xff] }
0x21be   :  { %v2123_v32 = vmul.f32 %v3243_v9, %v3233_v24  ;;  %v2124_v20 = vmul.f32 %v3243_v9, %v3235_v51  ;;  %v2125_v21 = vmul.f32 %v3243_v9, %v3237_v40  ;;  %v2126_v52 = vmul.f32 %v3243_v9, %v3239_v43  ;;  %v2351_v51 = vld [vmem:[#allocation6 + $0x10] sm:$0xff]  ;;  %v2342_v40 = vld [vmem:[#allocation5 + $0x8] sm:$0xff]  ;;  %v2626_v9 = vld [vmem:[%s3905_s11] ss:$0 sm:$0xff] }
0x21bf   :  { %2340 = vst.msk [vmem:[%s3903_s13 + $0x38] sm:$0xff] %vm2332_vm6, %v2127_v46  ;;  %v2128_v6 = vmul.f32 %v3252_v27, %v2120_v47  ;;  %v2129_v54 = vmul.f32 %v3253_v53, %v2121_v48  ;;  %v2130_v35 = vmul.f32 %v3254_v11, %v2122_v50  ;;  %2333 = vst.msk [vmem:[%s3903_s13] sm:$0xff] %vm2332_vm6, %v2120_v47 }
0x21c0   :  { %2334 = vst.msk [vmem:[%s3903_s13 + $0x8] sm:$0xff] %vm2332_vm6, %v2121_v48  ;;  %2335 = vst.msk [vmem:[%s3903_s13 + $0x10] sm:$0xff] %vm2332_vm6, %v2122_v50  ;;  %v3811_v39 = vpop.f32.mrb[24].mxu0  ;;  %v2131_v42 = vmul.f32 %v3255_v22, %v2123_v32  ;;  %v2132_v2 = vmul.f32 %v3256_v59, %v2124_v20  ;;  %v2133_v63 = vmul.f32 %v3257_v62, %v2125_v21 }
0x21c1   :  { %2336 = vst.msk [vmem:[%s3903_s13 + $0x18] sm:$0xff] %vm2332_vm6, %v2123_v32  ;;  %2337 = vst.msk [vmem:[%s3903_s13 + $0x20] sm:$0xff] %vm2332_vm6, %v2124_v20  ;;  %v2934_v14 = vpop.f32.mrb[25].mxu0  ;;  %v2136_v56 = vsel %vm324_vm3, %v2128_v6, 0.0  ;;  %v2137_v57 = vsel %vm324_vm3, %v2129_v54, 0.0  ;;  %v2139_v60 = vsel %vm324_vm3, %v2130_v35, 0.0  ;;  %v2134_v3 = vmul.f32 %v3258_v30, %v2126_v52 }
0x21c2   :  { %2338 = vst.msk [vmem:[%s3903_s13 + $0x28] sm:$0xff] %vm2332_vm6, %v2125_v21  ;;  %2339 = vst.msk [vmem:[%s3903_s13 + $0x30] sm:$0xff] %vm2332_vm6, %v2126_v52  ;;  %v2138_v58 = vadd.f32 %v2137_v57, %v2136_v56  ;;  %v2141_v0 = vsel %vm324_vm3, %v2131_v42, 0.0  ;;  %v2143_v4 = vsel %vm324_vm3, %v2132_v2, 0.0  ;;  %v2135_v12 = vmul.f32 %v3259_v28, %v2127_v46 }
0x21c3   :  { %v2145_v15 = vsel %vm324_vm3, %v2133_v63, 0.0  ;;  %v2147_v23 = vsel %vm324_vm3, %v2134_v3, 0.0  ;;  %v3067_v49 = vpack.c.bf16 %v2346_v26, %v2345_v36  ;;  %v3071_v24 = vpack.c.bf16 %v2348_v16, %v2347_v38 }
0x21c4   :  { %v2140_v61 = vadd.f32 %v2139_v60, %v2138_v58  ;;  %v2149_v33 = vsel %vm324_vm3, %v2135_v12, 0.0 }
0x21c6   :  { %v2142_v1 = vadd.f32 %v2141_v0, %v2140_v61 }
0x21c8   :  { %v2144_v8 = vadd.f32 %v2143_v4, %v2142_v1 }
0x21ca   :  { %v2146_v18 = vadd.f32 %v2145_v15, %v2144_v8 }
0x21cc   :  { %v2148_v31 = vadd.f32 %v2147_v23, %v2146_v18 }
0x21ce   :  { %v2150_v34 = vadd.f32 %v2149_v33, %v2148_v31 }
0x21d0   :  { %2922 = vmatmul.mubr.msk.f32.vlgmr.msra.gmra.mrb[16].mxu1 %vm324_vm3, %v2150_v34  ;;  %2331 = vst.msk [vmem:[#allocation6 + $0x18] sm:$0xff] %vm324_vm3, %v2150_v34 }
0x21d1   :  { %3062 = vmatpush3.bf16.msra.mxu1 %v3792_v10  ;;  %2943 = vmatprep.mubr.msk.f32.mxu1 %vm324_vm3, %v2349_v37 }
0x21d2   :  { %3064 = vmatprep.subr.bf16.mxu1 %v3063_v55 }
0x21d5   :  { %3066 = vmatpush3.bf16.msra.mxu1 %v3063_v55 }
0x21d6   :  { %3068 = vmatprep.subr.bf16.mxu1 %v3067_v49 }
0x21d7   :  { %v2352_v10 = vld [vmem:[#allocation6 + $0x18] sm:$0xff] }
0x21d8   :  { %2944 = vmatmul.mubr.msk.f32.vlgmr.msra.gmra.mrb[18].mxu1 %vm324_vm3, %v2350_v7 }
0x21d9   :  { %2946 = vmatprep.mubr.msk.f32.mxu1 %vm324_vm3, %v2351_v51  ;;  %3070 = vmatpush3.bf16.msra.mxu1 %v3067_v49 }
0x21da   :  { %3072 = vmatprep.subr.bf16.mxu1 %v3071_v24 }
0x21dc   :  { %2947 = vmatmul.mubr.msk.f32.gmra.mrb[20].mxu1 %vm324_vm3, %v2352_v10 }
0x21dd   :  { %3074 = vmatpush3.bf16.msra.mxu1 %v3071_v24  ;;  %2957 = vmatprep.mubr.msk.f32.mxu1 %vm324_vm3, %v2341_v5 }
0x21e0   :  { %2958 = vmatmul.mubr.msk.f32.vlgmr.msra.gmra.mrb[18].mxu1 %vm324_vm3, %v2342_v40 }
0x21e1   :  { %2960 = vmatprep.mubr.msk.f32.mxu1 %vm324_vm3, %v2343_v41 }
0x22a3   :  { %v2222_v43 = vpop.f32.mrb[16].mxu1 }
0x22a4   :  { %v2226_v44 = vadd.f32 %v2222_v43, %v3464_v17  ;;  %v2923_v13 = vpop.f32.mrb[17].mxu1 }
0x22a6   :  { %v2299_v45 = vadd.f32 %v3811_v39, %v2226_v44 }
0x22a8   :  { %3244 = vtanh.f32 %v2299_v45  ;;  %v2617_v17 = vmul.f32 -1.442695, %v2299_v45 }
0x22aa   :  { %3246 = vpow2.f32 %v2617_v17 }
0x22b2   :  { %v3245_v46 = vpop.eup %3244 }
0x22b3   :  { %v2959_v47 = vpop.f32.mrb[18].mxu1  ;;  %2309 = vrot.lane.b32.xlu1 %v3245_v46, %s3263_s4 }
0x22b4   :  { %v2559_v48 = vadd.f32 %v2959_v47, %v2626_v9  ;;  %v2532_v50 = vpop.f32.mrb[19].mxu1  ;;  %v3247_v20 = vpop.eup %3246 }
0x22b5   :  { %v2558_v32 = vadd.f32 %v2626_v9, %v2532_v50  ;;  %v2303_v21 = vadd.f32 1.0, %v3247_v20 }
0x22b6   :  { %2564 = vst.msk [vmem:[%s3906_s12 + $0x8] sm:$0xff] %vm2562_vm7, %v2559_v48 }
0x22b7   :  { %2563 = vst.msk [vmem:[%s3906_s12] sm:$0xff] %vm2562_vm7, %v2558_v32  ;;  %3248 = vrcp.f32 %v2303_v21 }
0x22c1   :  { %v3249_v52 = vpop.eup %3248 }
0x22c2   :  { %v2307_v53 = vmul.f32 %v3249_v52, %v3763_v19 }
0x2325   :  { %v2310_v27 = vpop.permute.xlu1 %2309 }
0x2326   :  { %v2312_v6 = vmul.f32 %v3249_v52, %v2310_v27 }
0x2328   :  { %2314 = vrot.lane.b32.xlu0 %v2312_v6, %s3264_s16 }
0x239a   :  { %v2315_v54 = vpop.permute.xlu0 %2314 }
0x239b   :  { %v2317_v11 = vadd.f32 %v2315_v54, %v2307_v53 }
0x239d   :  { %3250 = vtanh.f32 %v2317_v11 }
0x23a7   :  { %v3251_v35 = vpop.eup %3250 }
0x23a8   :  { %2320 = vrot.lane.b32.xlu1 %v3251_v35, %s3263_s4 }
0x241a   :  { %v2321_v39 = vpop.permute.xlu1 %2320 }
0x241b   :  { %v2323_v14 = vmul.f32 %v3249_v52, %v2321_v39 }
0x241d   :  { %2325 = vrot.lane.b32.xlu1 %v2323_v14, %s3264_s16 }
0x248f   :  { %v2326_v22 = vpop.permute.xlu1 %2325 }
0x2490   :  { %2329 = vst.msk [vmem:[#allocation5 + $0x18] sm:$0xff] %vm324_vm3, %v2326_v22 }
0x2497   :  { %v2344_v42 = vld [vmem:[#allocation5 + $0x18] sm:$0xff] }
0x2498   :  { %2961 = vmatmul.mubr.msk.f32.gmra.mrb[20].mxu1 %vm324_vm3, %v2344_v42 }
0x256b   :  { %v2962_v56 = vpop.f32.mrb[20].mxu1 }
0x256c   :  { %v2561_v57 = vadd.f32 %v2962_v56, %v2626_v9  ;;  %v2542_v58 = vpop.f32.mrb[21].mxu1 }
0x256d   :  { %v2560_v19 = vadd.f32 %v2626_v9, %v2542_v58 }
0x256e   :  { %2566 = vst.msk [vmem:[%s3906_s12 + $0x18] sm:$0xff] %vm2562_vm7, %v2561_v57 }
0x256f   :  { %2565 = vst.msk [vmem:[%s3906_s12 + $0x10] sm:$0xff] %vm2562_vm7, %v2560_v19 }

</bundles_post_ra>
